<compile_context>
chip_gen: v6e
topology: v6e:2x2x1
jax: 0.10.0
libtpu: 0.0.40
codegen_flags: <defaults>
</compile_context>

<pallas_src>
import jax
import jax.numpy as jnp
from jax.experimental import pallas as pl
from jax.experimental.pallas import tpu as pltpu

# ---------------- small synthetic DINOv2-style config ----------------
IMG = 16          # image spatial size
PATCH = 8         # patch size
CIN = 3           # input channels (NCHW)
HIDDEN = 64       # hidden size (giant uses 1536)
HEADS = 4         # attention heads
HEAD_DIM = HIDDEN // HEADS
LAYERS = 2        # transformer layers (giant uses 40)
MLP_RATIO = 4
# DINOv2 SwiGLU hidden-dim rule: (int(mlp_ratio*h*2/3)+7)//8*8
FFN = (int(HIDDEN * MLP_RATIO * 2 / 3) + 7) // 8 * 8       # 176
FFN_PAD = 256     # lane-dense FFN width (zero-padded; toy-shape-only)
NCLASSES = 500
NCLASSES_PAD = 512   # lane-dense classifier width; sliced back to 500
EPS = 1e-6
NPATCH = (IMG // PATCH) ** 2
SEQ = NPATCH + 1     # cls token + patches
SEQ_PAD = 8          # pad sequence to one sublane tile per image
KPATCH = CIN * PATCH * PATCH


def _ln(x, g, b):
    mu = jnp.mean(x, axis=-1, keepdims=True)
    var = jnp.mean(jnp.square(x - mu), axis=-1, keepdims=True)
    return (x - mu) * jax.lax.rsqrt(var + EPS) * g + b


# ---------------- fused Pallas kernel (one image per grid step) ----------------
def _dinov2_fused_kernel(
    patches_ref, patch_w_ref, h_add_ref,
    ln1_g_ref, ln1_b_ref, wqkv_ref, bqkv_ref, wo_ref, bo_ref, ls1_ref,
    ln2_g_ref, ln2_b_ref, wg_ref, bg_ref, wu_ref, bu_ref, wout_ref, bout_ref,
    ls2_ref, lnf_g_ref, lnf_b_ref, clsw_ref, clsb_ref,
    logits_ref,
):
    f32 = jnp.float32
    bf16 = jnp.bfloat16
    scale = 1.0 / (HEAD_DIM ** 0.5)

    # ---- patch embedding + cls token + positional embedding (fused) ----
    # patches_ref: (1, SEQ_PAD, KPATCH) bf16; padded rows are all-zero.
    h = jnp.dot(patches_ref[0], patch_w_ref[...], preferred_element_type=f32)
    h = h + h_add_ref[...]                                   # (SEQ_PAD, HIDDEN) f32

    # padded key positions (s >= SEQ) must not participate in the softmax
    kmask = jax.lax.broadcasted_iota(jnp.int32, (SEQ_PAD, SEQ_PAD), 1) < SEQ

    for l in range(LAYERS):
        # --- MHSA: LN1 -> fused QKV -> per-head attention -> head concat ->
        #     single Wo matmul -> LayerScale residual ---
        xn = _ln(h, ln1_g_ref[l], ln1_b_ref[l])
        qkv = jnp.dot(xn.astype(bf16), wqkv_ref[l],
                      preferred_element_type=f32) + bqkv_ref[l]  # (SEQ_PAD, 3H) f32

        heads = []
        for hd in range(HEADS):
            q = qkv[:, hd * HEAD_DIM:(hd + 1) * HEAD_DIM]
            k = qkv[:, HIDDEN + hd * HEAD_DIM:HIDDEN + (hd + 1) * HEAD_DIM]
            v = qkv[:, 2 * HIDDEN + hd * HEAD_DIM:
                    2 * HIDDEN + (hd + 1) * HEAD_DIM]
            # q @ k^T via dot_general contracting last dims (no explicit .T)
            s = jax.lax.dot_general(q.astype(bf16), k.astype(bf16),
                                    (((1,), (1,)), ((), ())),
                                    preferred_element_type=f32) * scale
            s = jnp.where(kmask, s, -1e30)
            m = jnp.max(s, axis=-1, keepdims=True)
            p = jnp.exp(s - m)
            p = p * pl.reciprocal(jnp.sum(p, axis=-1, keepdims=True),
                                  approx=True)
            heads.append(jnp.dot(p.astype(bf16), v.astype(bf16),
                                 preferred_element_type=f32))  # (SEQ_PAD, HEAD_DIM)
        o_all = jnp.concatenate(heads, axis=1)                 # (SEQ_PAD, HIDDEN)
        attn = jnp.dot(o_all.astype(bf16), wo_ref[l],
                       preferred_element_type=f32) + bo_ref[l]
        h = h + attn * ls1_ref[l]                              # LayerScale residual

        # --- MLP: LN2 -> SwiGLU (split gate/up, lane-dense FFN_PAD) ->
        #     out proj -> LayerScale residual ---
        xn = _ln(h, ln2_g_ref[l], ln2_b_ref[l])
        xb = xn.astype(bf16)
        g = jnp.dot(xb, wg_ref[l], preferred_element_type=f32) + bg_ref[l]
        u = jnp.dot(xb, wu_ref[l], preferred_element_type=f32) + bu_ref[l]
        mid = (g * jax.nn.sigmoid(g)) * u                      # silu(gate) * up, f32
        out = jnp.dot(mid.astype(bf16), wout_ref[l],
                      preferred_element_type=f32) + bout_ref[l]
        h = h + out * ls2_ref[l]

    # --- final LN + classifier on the CLS row only (lane-dense 512 store) ---
    h_cls = h[0:1, :]                                          # (1, HIDDEN)
    hf = _ln(h_cls, lnf_g_ref[...], lnf_b_ref[...])
    logits = jnp.dot(hf.astype(bf16), clsw_ref[...],
                     preferred_element_type=f32) + clsb_ref[...]  # (1, 512)
    logits_ref[...] = logits[None, :, :]                       # (1, 1, 512)


# ---------------- parameters (deterministic synthetic init) ----------------
def init_params(key):
    def nrm(k, shape, scale=0.02):
        return scale * jax.random.normal(k, shape, dtype=jnp.float32)

    keys = iter(jax.random.split(key, 256))
    params = {
        "patch_w": nrm(next(keys), (KPATCH, HIDDEN)),
        "patch_b": nrm(next(keys), (HIDDEN,)),
        "cls": nrm(next(keys), (1, 1, HIDDEN)),
        "pos": nrm(next(keys), (1, SEQ, HIDDEN)),
        "layers": [],
        "lnf_g": jnp.ones((HIDDEN,), jnp.float32),
        "lnf_b": jnp.zeros((HIDDEN,), jnp.float32),
    }
    for _ in range(LAYERS):
        params["layers"].append({
            "ln1_g": 1.0 + nrm(next(keys), (HIDDEN,)),
            "ln1_b": nrm(next(keys), (HIDDEN,)),
            "wq": nrm(next(keys), (HIDDEN, HIDDEN)), "bq": nrm(next(keys), (HIDDEN,)),
            "wk": nrm(next(keys), (HIDDEN, HIDDEN)), "bk": nrm(next(keys), (HIDDEN,)),
            "wv": nrm(next(keys), (HIDDEN, HIDDEN)), "bv": nrm(next(keys), (HIDDEN,)),
            "wo": nrm(next(keys), (HIDDEN, HIDDEN)), "bo": nrm(next(keys), (HIDDEN,)),
            "ls1": 1.0 + nrm(next(keys), (HIDDEN,)),
            "ln2_g": 1.0 + nrm(next(keys), (HIDDEN,)),
            "ln2_b": nrm(next(keys), (HIDDEN,)),
            "w_in": nrm(next(keys), (HIDDEN, 2 * FFN)),
            "b_in": nrm(next(keys), (2 * FFN,)),
            "w_out": nrm(next(keys), (FFN, HIDDEN)),
            "b_out": nrm(next(keys), (HIDDEN,)),
            "ls2": 1.0 + nrm(next(keys), (HIDDEN,)),
        })
    params["cls_w"] = nrm(next(keys), (HIDDEN, NCLASSES))
    params["cls_b"] = nrm(next(keys), (NCLASSES,))
    return params


# ---------------- forward pass (single fused pallas_call, grid over batch) ----
@jax.jit
def dinov2_forward(params, x):
    B = x.shape[0]
    bf16 = jnp.bfloat16

    # --- patchify NCHW -> (B, NPATCH, C*p*p) with Conv2d (C, ph, pw) order,
    #     padded so each image occupies one 8-row sublane tile ---
    g = IMG // PATCH
    patches = x.reshape(B, CIN, g, PATCH, g, PATCH).transpose(0, 2, 4, 1, 3, 5)
    patches = patches.reshape(B, NPATCH, KPATCH)
    patches_pad = jnp.concatenate(
        [jnp.zeros((B, 1, KPATCH), jnp.float32),            # cls-token slot
         patches,
         jnp.zeros((B, SEQ_PAD - SEQ, KPATCH), jnp.float32)], axis=1)
    patches_pad = patches_pad.astype(bf16)                   # (B, SEQ_PAD, KPATCH)

    # --- additive table folding cls token, patch bias and positional embed
    #     (passed ONCE, broadcast per image inside the kernel) ---
    pos = params["pos"][0]                                   # (SEQ, H)
    cls = params["cls"][0, 0]                                # (H,)
    h_add = jnp.concatenate(
        [(cls + pos[0])[None, :],
         params["patch_b"][None, :] + pos[1:SEQ],
         jnp.zeros((SEQ_PAD - SEQ, HIDDEN), jnp.float32)], axis=0)  # (SEQ_PAD, H)

    # --- per-layer weight packing: fused QKV, full Wo, split+padded SwiGLU;
    #     matmul weights in bf16, bias/LN/LayerScale in f32 ---
    Ls = params["layers"]
    pad_f = FFN_PAD - FFN
    stk1 = lambda n: jnp.stack([l[n] for l in Ls])[:, None, :]     # (L, 1, ·) f32
    wqkv = jnp.stack(
        [jnp.concatenate([l["wq"], l["wk"], l["wv"]], axis=1) for l in Ls]).astype(bf16)
    bqkv = jnp.stack(
        [jnp.concatenate([l["bq"], l["bk"], l["bv"]]) for l in Ls])[:, None, :]
    wo = jnp.stack([l["wo"] for l in Ls]).astype(bf16)             # (L, H, H)
    wg = jnp.stack([jnp.pad(l["w_in"][:, :FFN], ((0, 0), (0, pad_f)))
                    for l in Ls]).astype(bf16)
    wu = jnp.stack([jnp.pad(l["w_in"][:, FFN:], ((0, 0), (0, pad_f)))
                    for l in Ls]).astype(bf16)
    bg = jnp.stack([jnp.pad(l["b_in"][:FFN], (0, pad_f)) for l in Ls])[:, None, :]
    bu = jnp.stack([jnp.pad(l["b_in"][FFN:], (0, pad_f)) for l in Ls])[:, None, :]
    wout = jnp.stack([jnp.pad(l["w_out"], ((0, pad_f), (0, 0)))
                      for l in Ls]).astype(bf16)
    clsw = jnp.pad(params["cls_w"],
                   ((0, 0), (0, NCLASSES_PAD - NCLASSES))).astype(bf16)
    clsb = jnp.pad(params["cls_b"], (0, NCLASSES_PAD - NCLASSES))[None, :]
    patch_w = params["patch_w"].astype(bf16)
    lnf_g = params["lnf_g"][None, :]
    lnf_b = params["lnf_b"][None, :]

    args = (patches_pad, patch_w, h_add,
            stk1("ln1_g"), stk1("ln1_b"), wqkv, bqkv, wo, stk1("bo"), stk1("ls1"),
            stk1("ln2_g"), stk1("ln2_b"), wg, bg, wu, bu, wout, stk1("b_out"),
            stk1("ls2"), lnf_g, lnf_b, clsw, clsb)

    def full_spec(a):
        nd = a.ndim
        return pl.BlockSpec(a.shape, lambda b, _nd=nd: (0,) * _nd)

    in_specs = ([pl.BlockSpec((1, SEQ_PAD, KPATCH), lambda b: (b, 0, 0))]
                + [full_spec(a) for a in args[1:]])

    logits_pad = pl.pallas_call(
        _dinov2_fused_kernel,
        grid=(B,),
        in_specs=in_specs,
        out_specs=pl.BlockSpec((1, 1, NCLASSES_PAD), lambda b: (b, 0, 0)),
        out_shape=jax.ShapeDtypeStruct((B, 1, NCLASSES_PAD), jnp.float32),
        compiler_params=pltpu.CompilerParams(
            dimension_semantics=("parallel",)),
    )(*args)

    # CLS-token logits, classifier un-padded 512 -> 500
    return logits_pad[:, 0, :NCLASSES]


if __name__ == "__main__":
    key = jax.random.PRNGKey(0)
    pkey, xkey = jax.random.split(key)
    params = init_params(pkey)
    x = jax.random.normal(xkey, (2, CIN, IMG, IMG), dtype=jnp.float32)  # NCHW
    logits = dinov2_forward(params, x)
    jax.block_until_ready(logits)
    assert logits.shape == (2, NCLASSES) and logits.dtype == jnp.float32
    print("KERNEL_OK")
</pallas_src>

<mosaic_0001>
module attributes {stable_mosaic.version = 11 : i64} {
  func.func @_dinov2_fused_kernel(%arg0: i32, %arg1: memref<1x8x192xbf16, #tpu.memory_space<vmem>>, %arg2: memref<192x64xbf16, #tpu.memory_space<vmem>>, %arg3: memref<8x64xf32, #tpu.memory_space<vmem>>, %arg4: memref<2x1x64xf32, #tpu.memory_space<vmem>>, %arg5: memref<2x1x64xf32, #tpu.memory_space<vmem>>, %arg6: memref<2x64x192xbf16, #tpu.memory_space<vmem>>, %arg7: memref<2x1x192xf32, #tpu.memory_space<vmem>>, %arg8: memref<2x64x64xbf16, #tpu.memory_space<vmem>>, %arg9: memref<2x1x64xf32, #tpu.memory_space<vmem>>, %arg10: memref<2x1x64xf32, #tpu.memory_space<vmem>>, %arg11: memref<2x1x64xf32, #tpu.memory_space<vmem>>, %arg12: memref<2x1x64xf32, #tpu.memory_space<vmem>>, %arg13: memref<2x64x256xbf16, #tpu.memory_space<vmem>>, %arg14: memref<2x1x256xf32, #tpu.memory_space<vmem>>, %arg15: memref<2x64x256xbf16, #tpu.memory_space<vmem>>, %arg16: memref<2x1x256xf32, #tpu.memory_space<vmem>>, %arg17: memref<2x256x64xbf16, #tpu.memory_space<vmem>>, %arg18: memref<2x1x64xf32, #tpu.memory_space<vmem>>, %arg19: memref<2x1x64xf32, #tpu.memory_space<vmem>>, %arg20: memref<1x64xf32, #tpu.memory_space<vmem>>, %arg21: memref<1x64xf32, #tpu.memory_space<vmem>>, %arg22: memref<64x512xbf16, #tpu.memory_space<vmem>>, %arg23: memref<1x512xf32, #tpu.memory_space<vmem>>, %arg24: memref<1x1x512xf32, #tpu.memory_space<vmem>>) attributes {dimension_semantics = [#tpu.dimension_semantics<parallel>], iteration_bounds = array<i64: 2>, scalar_prefetch = 0 : i64, scratch_operands = 0 : i64, tpu.core_type = #tpu.core_type<tc>, window_params = [{transform_indices = @transform_0, window_bounds = array<i64: 1, 8, 192>}, {pipeline_mode = #tpu.pipeline_mode<synchronous>, transform_indices = @transform_1, window_bounds = array<i64: 192, 64>}, {pipeline_mode = #tpu.pipeline_mode<synchronous>, transform_indices = @transform_2, window_bounds = array<i64: 8, 64>}, {pipeline_mode = #tpu.pipeline_mode<synchronous>, transform_indices = @transform_3, window_bounds = array<i64: 2, 1, 64>}, {pipeline_mode = #tpu.pipeline_mode<synchronous>, transform_indices = @transform_4, window_bounds = array<i64: 2, 1, 64>}, {pipeline_mode = #tpu.pipeline_mode<synchronous>, transform_indices = @transform_5, window_bounds = array<i64: 2, 64, 192>}, {pipeline_mode = #tpu.pipeline_mode<synchronous>, transform_indices = @transform_6, window_bounds = array<i64: 2, 1, 192>}, {pipeline_mode = #tpu.pipeline_mode<synchronous>, transform_indices = @transform_7, window_bounds = array<i64: 2, 64, 64>}, {pipeline_mode = #tpu.pipeline_mode<synchronous>, transform_indices = @transform_8, window_bounds = array<i64: 2, 1, 64>}, {pipeline_mode = #tpu.pipeline_mode<synchronous>, transform_indices = @transform_9, window_bounds = array<i64: 2, 1, 64>}, {pipeline_mode = #tpu.pipeline_mode<synchronous>, transform_indices = @transform_10, window_bounds = array<i64: 2, 1, 64>}, {pipeline_mode = #tpu.pipeline_mode<synchronous>, transform_indices = @transform_11, window_bounds = array<i64: 2, 1, 64>}, {pipeline_mode = #tpu.pipeline_mode<synchronous>, transform_indices = @transform_12, window_bounds = array<i64: 2, 64, 256>}, {pipeline_mode = #tpu.pipeline_mode<synchronous>, transform_indices = @transform_13, window_bounds = array<i64: 2, 1, 256>}, {pipeline_mode = #tpu.pipeline_mode<synchronous>, transform_indices = @transform_14, window_bounds = array<i64: 2, 64, 256>}, {pipeline_mode = #tpu.pipeline_mode<synchronous>, transform_indices = @transform_15, window_bounds = array<i64: 2, 1, 256>}, {pipeline_mode = #tpu.pipeline_mode<synchronous>, transform_indices = @transform_16, window_bounds = array<i64: 2, 256, 64>}, {pipeline_mode = #tpu.pipeline_mode<synchronous>, transform_indices = @transform_17, window_bounds = array<i64: 2, 1, 64>}, {pipeline_mode = #tpu.pipeline_mode<synchronous>, transform_indices = @transform_18, window_bounds = array<i64: 2, 1, 64>}, {pipeline_mode = #tpu.pipeline_mode<synchronous>, transform_indices = @transform_19, window_bounds = array<i64: 1, 64>}, {pipeline_mode = #tpu.pipeline_mode<synchronous>, transform_indices = @transform_20, window_bounds = array<i64: 1, 64>}, {pipeline_mode = #tpu.pipeline_mode<synchronous>, transform_indices = @transform_21, window_bounds = array<i64: 64, 512>}, {pipeline_mode = #tpu.pipeline_mode<synchronous>, transform_indices = @transform_22, window_bounds = array<i64: 1, 512>}, {transform_indices = @transform_23, window_bounds = array<i64: 1, 1, 512>}]} {
    %c0 = arith.constant 0 : index
    %c0_0 = arith.constant 0 : index
    %c0_1 = arith.constant 0 : index
    %0 = vector.load %arg1[%c0, %c0_0, %c0_1] : memref<1x8x192xbf16, #tpu.memory_space<vmem>>, vector<1x8x192xbf16>
    %1 = vector.shape_cast %0 : vector<1x8x192xbf16> to vector<8x192xbf16>
    %c0_2 = arith.constant 0 : index
    %c0_3 = arith.constant 0 : index
    %2 = vector.load %arg2[%c0_2, %c0_3] : memref<192x64xbf16, #tpu.memory_space<vmem>>, vector<192x64xbf16>
    %cst = arith.constant dense<0.000000e+00> : vector<8x64xf32>
    %3 = tpu.matmul %1, %2, %cst {dimension_numbers = #tpu.dot_dimension_numbers<[1], [0], [0], [1], [0, 0, 1, 1], [], []>} : vector<8x192xbf16>, vector<192x64xbf16>, vector<8x64xf32> -> vector<8x64xf32>
    %c0_4 = arith.constant 0 : index
    %c0_5 = arith.constant 0 : index
    %4 = vector.load %arg3[%c0_4, %c0_5] : memref<8x64xf32, #tpu.memory_space<vmem>>, vector<8x64xf32>
    %5 = arith.addf %3, %4 : vector<8x64xf32>
    %6 = tpu.iota {dimensions = array<i32: 1>} : vector<8x8xi32>
    %c5_i32 = arith.constant 5 : i32
    %7 = vector.broadcast %c5_i32 : i32 to vector<8x8xi32>
    %8 = arith.cmpi slt, %6, %7 : vector<8x8xi32>
    %c0_6 = arith.constant 0 : index
    %c0_7 = arith.constant 0 : index
    %c0_8 = arith.constant 0 : index
    %9 = vector.load %arg4[%c0_6, %c0_7, %c0_8] : memref<2x1x64xf32, #tpu.memory_space<vmem>>, vector<1x1x64xf32>
    %10 = vector.shape_cast %9 : vector<1x1x64xf32> to vector<1x64xf32>
    %c0_9 = arith.constant 0 : index
    %c0_10 = arith.constant 0 : index
    %c0_11 = arith.constant 0 : index
    %11 = vector.load %arg5[%c0_9, %c0_10, %c0_11] : memref<2x1x64xf32, #tpu.memory_space<vmem>>, vector<1x1x64xf32>
    %12 = vector.shape_cast %11 : vector<1x1x64xf32> to vector<1x64xf32>
    %cst_12 = arith.constant dense<0.000000e+00> : vector<8xf32>
    %13 = vector.multi_reduction <add>, %5, %cst_12 [1] : vector<8x64xf32> to vector<8xf32>
    %14 = vector.shape_cast %13 : vector<8xf32> to vector<8x1xf32>
    %cst_13 = arith.constant 6.400000e+01 : f32
    %15 = vector.broadcast %cst_13 : f32 to vector<8x1xf32>
    %16 = arith.divf %14, %15 : vector<8x1xf32>
    %17 = vector.broadcast %16 : vector<8x1xf32> to vector<8x64xf32>
    %18 = arith.subf %5, %17 : vector<8x64xf32>
    %19 = arith.mulf %18, %18 : vector<8x64xf32>
    %cst_14 = arith.constant dense<0.000000e+00> : vector<8xf32>
    %20 = vector.multi_reduction <add>, %19, %cst_14 [1] : vector<8x64xf32> to vector<8xf32>
    %21 = vector.shape_cast %20 : vector<8xf32> to vector<8x1xf32>
    %cst_15 = arith.constant 6.400000e+01 : f32
    %22 = vector.broadcast %cst_15 : f32 to vector<8x1xf32>
    %23 = arith.divf %21, %22 : vector<8x1xf32>
    %24 = vector.broadcast %16 : vector<8x1xf32> to vector<8x64xf32>
    %25 = arith.subf %5, %24 : vector<8x64xf32>
    %cst_16 = arith.constant 9.99999997E-7 : f32
    %26 = vector.broadcast %cst_16 : f32 to vector<8x1xf32>
    %27 = arith.addf %23, %26 : vector<8x1xf32>
    %28 = math.rsqrt %27 : vector<8x1xf32>
    %29 = vector.broadcast %28 : vector<8x1xf32> to vector<8x64xf32>
    %30 = arith.mulf %25, %29 : vector<8x64xf32>
    %31 = vector.broadcast %10 : vector<1x64xf32> to vector<8x64xf32>
    %32 = arith.mulf %30, %31 : vector<8x64xf32>
    %33 = vector.broadcast %12 : vector<1x64xf32> to vector<8x64xf32>
    %34 = arith.addf %32, %33 : vector<8x64xf32>
    %35 = arith.truncf %34 : vector<8x64xf32> to vector<8x64xbf16>
    %c0_17 = arith.constant 0 : index
    %c0_18 = arith.constant 0 : index
    %c0_19 = arith.constant 0 : index
    %36 = vector.load %arg6[%c0_17, %c0_18, %c0_19] : memref<2x64x192xbf16, #tpu.memory_space<vmem>>, vector<1x64x192xbf16>
    %37 = vector.shape_cast %36 : vector<1x64x192xbf16> to vector<64x192xbf16>
    %cst_20 = arith.constant dense<0.000000e+00> : vector<8x192xf32>
    %38 = tpu.matmul %35, %37, %cst_20 {dimension_numbers = #tpu.dot_dimension_numbers<[1], [0], [0], [1], [0, 0, 1, 1], [], []>} : vector<8x64xbf16>, vector<64x192xbf16>, vector<8x192xf32> -> vector<8x192xf32>
    %c0_21 = arith.constant 0 : index
    %c0_22 = arith.constant 0 : index
    %c0_23 = arith.constant 0 : index
    %39 = vector.load %arg7[%c0_21, %c0_22, %c0_23] : memref<2x1x192xf32, #tpu.memory_space<vmem>>, vector<1x1x192xf32>
    %40 = vector.shape_cast %39 : vector<1x1x192xf32> to vector<1x192xf32>
    %41 = vector.broadcast %40 : vector<1x192xf32> to vector<8x192xf32>
    %42 = arith.addf %38, %41 : vector<8x192xf32>
    %43 = vector.extract_strided_slice %42 {offsets = [0, 0], sizes = [8, 16], strides = [1, 1]} : vector<8x192xf32> to vector<8x16xf32>
    %44 = vector.extract_strided_slice %42 {offsets = [0, 64], sizes = [8, 16], strides = [1, 1]} : vector<8x192xf32> to vector<8x16xf32>
    %45 = vector.extract_strided_slice %42 {offsets = [0, 128], sizes = [8, 16], strides = [1, 1]} : vector<8x192xf32> to vector<8x16xf32>
    %46 = arith.truncf %43 : vector<8x16xf32> to vector<8x16xbf16>
    %47 = arith.truncf %44 : vector<8x16xf32> to vector<8x16xbf16>
    %cst_24 = arith.constant dense<0.000000e+00> : vector<8x8xf32>
    %48 = tpu.matmul %46, %47, %cst_24 {dimension_numbers = #tpu.dot_dimension_numbers<[1], [1], [0], [0], [0, 0, 1, 0], [], []>} : vector<8x16xbf16>, vector<8x16xbf16>, vector<8x8xf32> -> vector<8x8xf32>
    %cst_25 = arith.constant 2.500000e-01 : f32
    %49 = vector.broadcast %cst_25 : f32 to vector<8x8xf32>
    %50 = arith.mulf %48, %49 : vector<8x8xf32>
    %cst_26 = arith.constant -1.000000e+30 : f32
    %51 = vector.broadcast %cst_26 : f32 to vector<8x8xf32>
    %52 = arith.select %8, %50, %51 : vector<8x8xi1>, vector<8x8xf32>
    %cst_27 = arith.constant dense<0xFF800000> : vector<8xf32>
    %53 = vector.multi_reduction <maximumf>, %52, %cst_27 [1] : vector<8x8xf32> to vector<8xf32>
    %54 = vector.shape_cast %53 : vector<8xf32> to vector<8x1xf32>
    %55 = vector.broadcast %54 : vector<8x1xf32> to vector<8x8xf32>
    %56 = arith.subf %52, %55 : vector<8x8xf32>
    %57 = math.exp %56 : vector<8x8xf32>
    %cst_28 = arith.constant dense<0.000000e+00> : vector<8xf32>
    %58 = vector.multi_reduction <add>, %57, %cst_28 [1] : vector<8x8xf32> to vector<8xf32>
    %59 = vector.shape_cast %58 : vector<8xf32> to vector<8x1xf32>
    %60 = tpu.reciprocal %59 {approx = true} : vector<8x1xf32> -> vector<8x1xf32>
    %61 = vector.broadcast %60 : vector<8x1xf32> to vector<8x8xf32>
    %62 = arith.mulf %57, %61 : vector<8x8xf32>
    %63 = arith.truncf %62 : vector<8x8xf32> to vector<8x8xbf16>
    %64 = arith.truncf %45 : vector<8x16xf32> to vector<8x16xbf16>
    %cst_29 = arith.constant dense<0.000000e+00> : vector<8x16xf32>
    %65 = tpu.matmul %63, %64, %cst_29 {dimension_numbers = #tpu.dot_dimension_numbers<[1], [0], [0], [1], [0, 0, 1, 1], [], []>} : vector<8x8xbf16>, vector<8x16xbf16>, vector<8x16xf32> -> vector<8x16xf32>
    %66 = vector.extract_strided_slice %42 {offsets = [0, 16], sizes = [8, 16], strides = [1, 1]} : vector<8x192xf32> to vector<8x16xf32>
    %67 = vector.extract_strided_slice %42 {offsets = [0, 80], sizes = [8, 16], strides = [1, 1]} : vector<8x192xf32> to vector<8x16xf32>
    %68 = vector.extract_strided_slice %42 {offsets = [0, 144], sizes = [8, 16], strides = [1, 1]} : vector<8x192xf32> to vector<8x16xf32>
    %69 = arith.truncf %66 : vector<8x16xf32> to vector<8x16xbf16>
    %70 = arith.truncf %67 : vector<8x16xf32> to vector<8x16xbf16>
    %cst_30 = arith.constant dense<0.000000e+00> : vector<8x8xf32>
    %71 = tpu.matmul %69, %70, %cst_30 {dimension_numbers = #tpu.dot_dimension_numbers<[1], [1], [0], [0], [0, 0, 1, 0], [], []>} : vector<8x16xbf16>, vector<8x16xbf16>, vector<8x8xf32> -> vector<8x8xf32>
    %cst_31 = arith.constant 2.500000e-01 : f32
    %72 = vector.broadcast %cst_31 : f32 to vector<8x8xf32>
    %73 = arith.mulf %71, %72 : vector<8x8xf32>
    %cst_32 = arith.constant -1.000000e+30 : f32
    %74 = vector.broadcast %cst_32 : f32 to vector<8x8xf32>
    %75 = arith.select %8, %73, %74 : vector<8x8xi1>, vector<8x8xf32>
    %cst_33 = arith.constant dense<0xFF800000> : vector<8xf32>
    %76 = vector.multi_reduction <maximumf>, %75, %cst_33 [1] : vector<8x8xf32> to vector<8xf32>
    %77 = vector.shape_cast %76 : vector<8xf32> to vector<8x1xf32>
    %78 = vector.broadcast %77 : vector<8x1xf32> to vector<8x8xf32>
    %79 = arith.subf %75, %78 : vector<8x8xf32>
    %80 = math.exp %79 : vector<8x8xf32>
    %cst_34 = arith.constant dense<0.000000e+00> : vector<8xf32>
    %81 = vector.multi_reduction <add>, %80, %cst_34 [1] : vector<8x8xf32> to vector<8xf32>
    %82 = vector.shape_cast %81 : vector<8xf32> to vector<8x1xf32>
    %83 = tpu.reciprocal %82 {approx = true} : vector<8x1xf32> -> vector<8x1xf32>
    %84 = vector.broadcast %83 : vector<8x1xf32> to vector<8x8xf32>
    %85 = arith.mulf %80, %84 : vector<8x8xf32>
    %86 = arith.truncf %85 : vector<8x8xf32> to vector<8x8xbf16>
    %87 = arith.truncf %68 : vector<8x16xf32> to vector<8x16xbf16>
    %cst_35 = arith.constant dense<0.000000e+00> : vector<8x16xf32>
    %88 = tpu.matmul %86, %87, %cst_35 {dimension_numbers = #tpu.dot_dimension_numbers<[1], [0], [0], [1], [0, 0, 1, 1], [], []>} : vector<8x8xbf16>, vector<8x16xbf16>, vector<8x16xf32> -> vector<8x16xf32>
    %89 = vector.extract_strided_slice %42 {offsets = [0, 32], sizes = [8, 16], strides = [1, 1]} : vector<8x192xf32> to vector<8x16xf32>
    %90 = vector.extract_strided_slice %42 {offsets = [0, 96], sizes = [8, 16], strides = [1, 1]} : vector<8x192xf32> to vector<8x16xf32>
    %91 = vector.extract_strided_slice %42 {offsets = [0, 160], sizes = [8, 16], strides = [1, 1]} : vector<8x192xf32> to vector<8x16xf32>
    %92 = arith.truncf %89 : vector<8x16xf32> to vector<8x16xbf16>
    %93 = arith.truncf %90 : vector<8x16xf32> to vector<8x16xbf16>
    %cst_36 = arith.constant dense<0.000000e+00> : vector<8x8xf32>
    %94 = tpu.matmul %92, %93, %cst_36 {dimension_numbers = #tpu.dot_dimension_numbers<[1], [1], [0], [0], [0, 0, 1, 0], [], []>} : vector<8x16xbf16>, vector<8x16xbf16>, vector<8x8xf32> -> vector<8x8xf32>
    %cst_37 = arith.constant 2.500000e-01 : f32
    %95 = vector.broadcast %cst_37 : f32 to vector<8x8xf32>
    %96 = arith.mulf %94, %95 : vector<8x8xf32>
    %cst_38 = arith.constant -1.000000e+30 : f32
    %97 = vector.broadcast %cst_38 : f32 to vector<8x8xf32>
    %98 = arith.select %8, %96, %97 : vector<8x8xi1>, vector<8x8xf32>
    %cst_39 = arith.constant dense<0xFF800000> : vector<8xf32>
    %99 = vector.multi_reduction <maximumf>, %98, %cst_39 [1] : vector<8x8xf32> to vector<8xf32>
    %100 = vector.shape_cast %99 : vector<8xf32> to vector<8x1xf32>
    %101 = vector.broadcast %100 : vector<8x1xf32> to vector<8x8xf32>
    %102 = arith.subf %98, %101 : vector<8x8xf32>
    %103 = math.exp %102 : vector<8x8xf32>
    %cst_40 = arith.constant dense<0.000000e+00> : vector<8xf32>
    %104 = vector.multi_reduction <add>, %103, %cst_40 [1] : vector<8x8xf32> to vector<8xf32>
    %105 = vector.shape_cast %104 : vector<8xf32> to vector<8x1xf32>
    %106 = tpu.reciprocal %105 {approx = true} : vector<8x1xf32> -> vector<8x1xf32>
    %107 = vector.broadcast %106 : vector<8x1xf32> to vector<8x8xf32>
    %108 = arith.mulf %103, %107 : vector<8x8xf32>
    %109 = arith.truncf %108 : vector<8x8xf32> to vector<8x8xbf16>
    %110 = arith.truncf %91 : vector<8x16xf32> to vector<8x16xbf16>
    %cst_41 = arith.constant dense<0.000000e+00> : vector<8x16xf32>
    %111 = tpu.matmul %109, %110, %cst_41 {dimension_numbers = #tpu.dot_dimension_numbers<[1], [0], [0], [1], [0, 0, 1, 1], [], []>} : vector<8x8xbf16>, vector<8x16xbf16>, vector<8x16xf32> -> vector<8x16xf32>
    %112 = vector.extract_strided_slice %42 {offsets = [0, 48], sizes = [8, 16], strides = [1, 1]} : vector<8x192xf32> to vector<8x16xf32>
    %113 = vector.extract_strided_slice %42 {offsets = [0, 112], sizes = [8, 16], strides = [1, 1]} : vector<8x192xf32> to vector<8x16xf32>
    %114 = vector.extract_strided_slice %42 {offsets = [0, 176], sizes = [8, 16], strides = [1, 1]} : vector<8x192xf32> to vector<8x16xf32>
    %115 = arith.truncf %112 : vector<8x16xf32> to vector<8x16xbf16>
    %116 = arith.truncf %113 : vector<8x16xf32> to vector<8x16xbf16>
    %cst_42 = arith.constant dense<0.000000e+00> : vector<8x8xf32>
    %117 = tpu.matmul %115, %116, %cst_42 {dimension_numbers = #tpu.dot_dimension_numbers<[1], [1], [0], [0], [0, 0, 1, 0], [], []>} : vector<8x16xbf16>, vector<8x16xbf16>, vector<8x8xf32> -> vector<8x8xf32>
    %cst_43 = arith.constant 2.500000e-01 : f32
    %118 = vector.broadcast %cst_43 : f32 to vector<8x8xf32>
    %119 = arith.mulf %117, %118 : vector<8x8xf32>
    %cst_44 = arith.constant -1.000000e+30 : f32
    %120 = vector.broadcast %cst_44 : f32 to vector<8x8xf32>
    %121 = arith.select %8, %119, %120 : vector<8x8xi1>, vector<8x8xf32>
    %cst_45 = arith.constant dense<0xFF800000> : vector<8xf32>
    %122 = vector.multi_reduction <maximumf>, %121, %cst_45 [1] : vector<8x8xf32> to vector<8xf32>
    %123 = vector.shape_cast %122 : vector<8xf32> to vector<8x1xf32>
    %124 = vector.broadcast %123 : vector<8x1xf32> to vector<8x8xf32>
    %125 = arith.subf %121, %124 : vector<8x8xf32>
    %126 = math.exp %125 : vector<8x8xf32>
    %cst_46 = arith.constant dense<0.000000e+00> : vector<8xf32>
    %127 = vector.multi_reduction <add>, %126, %cst_46 [1] : vector<8x8xf32> to vector<8xf32>
    %128 = vector.shape_cast %127 : vector<8xf32> to vector<8x1xf32>
    %129 = tpu.reciprocal %128 {approx = true} : vector<8x1xf32> -> vector<8x1xf32>
    %130 = vector.broadcast %129 : vector<8x1xf32> to vector<8x8xf32>
    %131 = arith.mulf %126, %130 : vector<8x8xf32>
    %132 = arith.truncf %131 : vector<8x8xf32> to vector<8x8xbf16>
    %133 = arith.truncf %114 : vector<8x16xf32> to vector<8x16xbf16>
    %cst_47 = arith.constant dense<0.000000e+00> : vector<8x16xf32>
    %134 = tpu.matmul %132, %133, %cst_47 {dimension_numbers = #tpu.dot_dimension_numbers<[1], [0], [0], [1], [0, 0, 1, 1], [], []>} : vector<8x8xbf16>, vector<8x16xbf16>, vector<8x16xf32> -> vector<8x16xf32>
    %135 = tpu.concatenate %65, %88, %111, %134 in 1 : vector<8x16xf32>, vector<8x16xf32>, vector<8x16xf32>, vector<8x16xf32> -> vector<8x64xf32>
    %136 = arith.truncf %135 : vector<8x64xf32> to vector<8x64xbf16>
    %c0_48 = arith.constant 0 : index
    %c0_49 = arith.constant 0 : index
    %c0_50 = arith.constant 0 : index
    %137 = vector.load %arg8[%c0_48, %c0_49, %c0_50] : memref<2x64x64xbf16, #tpu.memory_space<vmem>>, vector<1x64x64xbf16>
    %138 = vector.shape_cast %137 : vector<1x64x64xbf16> to vector<64x64xbf16>
    %cst_51 = arith.constant dense<0.000000e+00> : vector<8x64xf32>
    %139 = tpu.matmul %136, %138, %cst_51 {dimension_numbers = #tpu.dot_dimension_numbers<[1], [0], [0], [1], [0, 0, 1, 1], [], []>} : vector<8x64xbf16>, vector<64x64xbf16>, vector<8x64xf32> -> vector<8x64xf32>
    %c0_52 = arith.constant 0 : index
    %c0_53 = arith.constant 0 : index
    %c0_54 = arith.constant 0 : index
    %140 = vector.load %arg9[%c0_52, %c0_53, %c0_54] : memref<2x1x64xf32, #tpu.memory_space<vmem>>, vector<1x1x64xf32>
    %141 = vector.shape_cast %140 : vector<1x1x64xf32> to vector<1x64xf32>
    %142 = vector.broadcast %141 : vector<1x64xf32> to vector<8x64xf32>
    %143 = arith.addf %139, %142 : vector<8x64xf32>
    %c0_55 = arith.constant 0 : index
    %c0_56 = arith.constant 0 : index
    %c0_57 = arith.constant 0 : index
    %144 = vector.load %arg10[%c0_55, %c0_56, %c0_57] : memref<2x1x64xf32, #tpu.memory_space<vmem>>, vector<1x1x64xf32>
    %145 = vector.shape_cast %144 : vector<1x1x64xf32> to vector<1x64xf32>
    %146 = vector.broadcast %145 : vector<1x64xf32> to vector<8x64xf32>
    %147 = arith.mulf %143, %146 : vector<8x64xf32>
    %148 = arith.addf %5, %147 : vector<8x64xf32>
    %c0_58 = arith.constant 0 : index
    %c0_59 = arith.constant 0 : index
    %c0_60 = arith.constant 0 : index
    %149 = vector.load %arg11[%c0_58, %c0_59, %c0_60] : memref<2x1x64xf32, #tpu.memory_space<vmem>>, vector<1x1x64xf32>
    %150 = vector.shape_cast %149 : vector<1x1x64xf32> to vector<1x64xf32>
    %c0_61 = arith.constant 0 : index
    %c0_62 = arith.constant 0 : index
    %c0_63 = arith.constant 0 : index
    %151 = vector.load %arg12[%c0_61, %c0_62, %c0_63] : memref<2x1x64xf32, #tpu.memory_space<vmem>>, vector<1x1x64xf32>
    %152 = vector.shape_cast %151 : vector<1x1x64xf32> to vector<1x64xf32>
    %cst_64 = arith.constant dense<0.000000e+00> : vector<8xf32>
    %153 = vector.multi_reduction <add>, %148, %cst_64 [1] : vector<8x64xf32> to vector<8xf32>
    %154 = vector.shape_cast %153 : vector<8xf32> to vector<8x1xf32>
    %cst_65 = arith.constant 6.400000e+01 : f32
    %155 = vector.broadcast %cst_65 : f32 to vector<8x1xf32>
    %156 = arith.divf %154, %155 : vector<8x1xf32>
    %157 = vector.broadcast %156 : vector<8x1xf32> to vector<8x64xf32>
    %158 = arith.subf %148, %157 : vector<8x64xf32>
    %159 = arith.mulf %158, %158 : vector<8x64xf32>
    %cst_66 = arith.constant dense<0.000000e+00> : vector<8xf32>
    %160 = vector.multi_reduction <add>, %159, %cst_66 [1] : vector<8x64xf32> to vector<8xf32>
    %161 = vector.shape_cast %160 : vector<8xf32> to vector<8x1xf32>
    %cst_67 = arith.constant 6.400000e+01 : f32
    %162 = vector.broadcast %cst_67 : f32 to vector<8x1xf32>
    %163 = arith.divf %161, %162 : vector<8x1xf32>
    %164 = vector.broadcast %156 : vector<8x1xf32> to vector<8x64xf32>
    %165 = arith.subf %148, %164 : vector<8x64xf32>
    %cst_68 = arith.constant 9.99999997E-7 : f32
    %166 = vector.broadcast %cst_68 : f32 to vector<8x1xf32>
    %167 = arith.addf %163, %166 : vector<8x1xf32>
    %168 = math.rsqrt %167 : vector<8x1xf32>
    %169 = vector.broadcast %168 : vector<8x1xf32> to vector<8x64xf32>
    %170 = arith.mulf %165, %169 : vector<8x64xf32>
    %171 = vector.broadcast %150 : vector<1x64xf32> to vector<8x64xf32>
    %172 = arith.mulf %170, %171 : vector<8x64xf32>
    %173 = vector.broadcast %152 : vector<1x64xf32> to vector<8x64xf32>
    %174 = arith.addf %172, %173 : vector<8x64xf32>
    %175 = arith.truncf %174 : vector<8x64xf32> to vector<8x64xbf16>
    %c0_69 = arith.constant 0 : index
    %c0_70 = arith.constant 0 : index
    %c0_71 = arith.constant 0 : index
    %176 = vector.load %arg13[%c0_69, %c0_70, %c0_71] : memref<2x64x256xbf16, #tpu.memory_space<vmem>>, vector<1x64x256xbf16>
    %177 = vector.shape_cast %176 : vector<1x64x256xbf16> to vector<64x256xbf16>
    %cst_72 = arith.constant dense<0.000000e+00> : vector<8x256xf32>
    %178 = tpu.matmul %175, %177, %cst_72 {dimension_numbers = #tpu.dot_dimension_numbers<[1], [0], [0], [1], [0, 0, 1, 1], [], []>} : vector<8x64xbf16>, vector<64x256xbf16>, vector<8x256xf32> -> vector<8x256xf32>
    %c0_73 = arith.constant 0 : index
    %c0_74 = arith.constant 0 : index
    %c0_75 = arith.constant 0 : index
    %179 = vector.load %arg14[%c0_73, %c0_74, %c0_75] : memref<2x1x256xf32, #tpu.memory_space<vmem>>, vector<1x1x256xf32>
    %180 = vector.shape_cast %179 : vector<1x1x256xf32> to vector<1x256xf32>
    %181 = vector.broadcast %180 : vector<1x256xf32> to vector<8x256xf32>
    %182 = arith.addf %178, %181 : vector<8x256xf32>
    %c0_76 = arith.constant 0 : index
    %c0_77 = arith.constant 0 : index
    %c0_78 = arith.constant 0 : index
    %183 = vector.load %arg15[%c0_76, %c0_77, %c0_78] : memref<2x64x256xbf16, #tpu.memory_space<vmem>>, vector<1x64x256xbf16>
    %184 = vector.shape_cast %183 : vector<1x64x256xbf16> to vector<64x256xbf16>
    %cst_79 = arith.constant dense<0.000000e+00> : vector<8x256xf32>
    %185 = tpu.matmul %175, %184, %cst_79 {dimension_numbers = #tpu.dot_dimension_numbers<[1], [0], [0], [1], [0, 0, 1, 1], [], []>} : vector<8x64xbf16>, vector<64x256xbf16>, vector<8x256xf32> -> vector<8x256xf32>
    %c0_80 = arith.constant 0 : index
    %c0_81 = arith.constant 0 : index
    %c0_82 = arith.constant 0 : index
    %186 = vector.load %arg16[%c0_80, %c0_81, %c0_82] : memref<2x1x256xf32, #tpu.memory_space<vmem>>, vector<1x1x256xf32>
    %187 = vector.shape_cast %186 : vector<1x1x256xf32> to vector<1x256xf32>
    %188 = vector.broadcast %187 : vector<1x256xf32> to vector<8x256xf32>
    %189 = arith.addf %185, %188 : vector<8x256xf32>
    %190 = arith.negf %182 : vector<8x256xf32>
    %191 = math.exp %190 : vector<8x256xf32>
    %cst_83 = arith.constant 1.000000e+00 : f32
    %192 = vector.broadcast %cst_83 : f32 to vector<8x256xf32>
    %193 = arith.addf %192, %191 : vector<8x256xf32>
    %194 = arith.divf %192, %193 : vector<8x256xf32>
    %195 = arith.mulf %182, %194 : vector<8x256xf32>
    %196 = arith.mulf %195, %189 : vector<8x256xf32>
    %197 = arith.truncf %196 : vector<8x256xf32> to vector<8x256xbf16>
    %c0_84 = arith.constant 0 : index
    %c0_85 = arith.constant 0 : index
    %c0_86 = arith.constant 0 : index
    %198 = vector.load %arg17[%c0_84, %c0_85, %c0_86] : memref<2x256x64xbf16, #tpu.memory_space<vmem>>, vector<1x256x64xbf16>
    %199 = vector.shape_cast %198 : vector<1x256x64xbf16> to vector<256x64xbf16>
    %cst_87 = arith.constant dense<0.000000e+00> : vector<8x64xf32>
    %200 = tpu.matmul %197, %199, %cst_87 {dimension_numbers = #tpu.dot_dimension_numbers<[1], [0], [0], [1], [0, 0, 1, 1], [], []>} : vector<8x256xbf16>, vector<256x64xbf16>, vector<8x64xf32> -> vector<8x64xf32>
    %c0_88 = arith.constant 0 : index
    %c0_89 = arith.constant 0 : index
    %c0_90 = arith.constant 0 : index
    %201 = vector.load %arg18[%c0_88, %c0_89, %c0_90] : memref<2x1x64xf32, #tpu.memory_space<vmem>>, vector<1x1x64xf32>
    %202 = vector.shape_cast %201 : vector<1x1x64xf32> to vector<1x64xf32>
    %203 = vector.broadcast %202 : vector<1x64xf32> to vector<8x64xf32>
    %204 = arith.addf %200, %203 : vector<8x64xf32>
    %c0_91 = arith.constant 0 : index
    %c0_92 = arith.constant 0 : index
    %c0_93 = arith.constant 0 : index
    %205 = vector.load %arg19[%c0_91, %c0_92, %c0_93] : memref<2x1x64xf32, #tpu.memory_space<vmem>>, vector<1x1x64xf32>
    %206 = vector.shape_cast %205 : vector<1x1x64xf32> to vector<1x64xf32>
    %207 = vector.broadcast %206 : vector<1x64xf32> to vector<8x64xf32>
    %208 = arith.mulf %204, %207 : vector<8x64xf32>
    %209 = arith.addf %148, %208 : vector<8x64xf32>
    %c1 = arith.constant 1 : index
    %c0_94 = arith.constant 0 : index
    %c0_95 = arith.constant 0 : index
    %210 = vector.load %arg4[%c1, %c0_94, %c0_95] : memref<2x1x64xf32, #tpu.memory_space<vmem>>, vector<1x1x64xf32>
    %211 = vector.shape_cast %210 : vector<1x1x64xf32> to vector<1x64xf32>
    %c1_96 = arith.constant 1 : index
    %c0_97 = arith.constant 0 : index
    %c0_98 = arith.constant 0 : index
    %212 = vector.load %arg5[%c1_96, %c0_97, %c0_98] : memref<2x1x64xf32, #tpu.memory_space<vmem>>, vector<1x1x64xf32>
    %213 = vector.shape_cast %212 : vector<1x1x64xf32> to vector<1x64xf32>
    %cst_99 = arith.constant dense<0.000000e+00> : vector<8xf32>
    %214 = vector.multi_reduction <add>, %209, %cst_99 [1] : vector<8x64xf32> to vector<8xf32>
    %215 = vector.shape_cast %214 : vector<8xf32> to vector<8x1xf32>
    %cst_100 = arith.constant 6.400000e+01 : f32
    %216 = vector.broadcast %cst_100 : f32 to vector<8x1xf32>
    %217 = arith.divf %215, %216 : vector<8x1xf32>
    %218 = vector.broadcast %217 : vector<8x1xf32> to vector<8x64xf32>
    %219 = arith.subf %209, %218 : vector<8x64xf32>
    %220 = arith.mulf %219, %219 : vector<8x64xf32>
    %cst_101 = arith.constant dense<0.000000e+00> : vector<8xf32>
    %221 = vector.multi_reduction <add>, %220, %cst_101 [1] : vector<8x64xf32> to vector<8xf32>
    %222 = vector.shape_cast %221 : vector<8xf32> to vector<8x1xf32>
    %cst_102 = arith.constant 6.400000e+01 : f32
    %223 = vector.broadcast %cst_102 : f32 to vector<8x1xf32>
    %224 = arith.divf %222, %223 : vector<8x1xf32>
    %225 = vector.broadcast %217 : vector<8x1xf32> to vector<8x64xf32>
    %226 = arith.subf %209, %225 : vector<8x64xf32>
    %cst_103 = arith.constant 9.99999997E-7 : f32
    %227 = vector.broadcast %cst_103 : f32 to vector<8x1xf32>
    %228 = arith.addf %224, %227 : vector<8x1xf32>
    %229 = math.rsqrt %228 : vector<8x1xf32>
    %230 = vector.broadcast %229 : vector<8x1xf32> to vector<8x64xf32>
    %231 = arith.mulf %226, %230 : vector<8x64xf32>
    %232 = vector.broadcast %211 : vector<1x64xf32> to vector<8x64xf32>
    %233 = arith.mulf %231, %232 : vector<8x64xf32>
    %234 = vector.broadcast %213 : vector<1x64xf32> to vector<8x64xf32>
    %235 = arith.addf %233, %234 : vector<8x64xf32>
    %236 = arith.truncf %235 : vector<8x64xf32> to vector<8x64xbf16>
    %c1_104 = arith.constant 1 : index
    %c0_105 = arith.constant 0 : index
    %c0_106 = arith.constant 0 : index
    %237 = vector.load %arg6[%c1_104, %c0_105, %c0_106] : memref<2x64x192xbf16, #tpu.memory_space<vmem>>, vector<1x64x192xbf16>
    %238 = vector.shape_cast %237 : vector<1x64x192xbf16> to vector<64x192xbf16>
    %cst_107 = arith.constant dense<0.000000e+00> : vector<8x192xf32>
    %239 = tpu.matmul %236, %238, %cst_107 {dimension_numbers = #tpu.dot_dimension_numbers<[1], [0], [0], [1], [0, 0, 1, 1], [], []>} : vector<8x64xbf16>, vector<64x192xbf16>, vector<8x192xf32> -> vector<8x192xf32>
    %c1_108 = arith.constant 1 : index
    %c0_109 = arith.constant 0 : index
    %c0_110 = arith.constant 0 : index
    %240 = vector.load %arg7[%c1_108, %c0_109, %c0_110] : memref<2x1x192xf32, #tpu.memory_space<vmem>>, vector<1x1x192xf32>
    %241 = vector.shape_cast %240 : vector<1x1x192xf32> to vector<1x192xf32>
    %242 = vector.broadcast %241 : vector<1x192xf32> to vector<8x192xf32>
    %243 = arith.addf %239, %242 : vector<8x192xf32>
    %244 = vector.extract_strided_slice %243 {offsets = [0, 0], sizes = [8, 16], strides = [1, 1]} : vector<8x192xf32> to vector<8x16xf32>
    %245 = vector.extract_strided_slice %243 {offsets = [0, 64], sizes = [8, 16], strides = [1, 1]} : vector<8x192xf32> to vector<8x16xf32>
    %246 = vector.extract_strided_slice %243 {offsets = [0, 128], sizes = [8, 16], strides = [1, 1]} : vector<8x192xf32> to vector<8x16xf32>
    %247 = arith.truncf %244 : vector<8x16xf32> to vector<8x16xbf16>
    %248 = arith.truncf %245 : vector<8x16xf32> to vector<8x16xbf16>
    %cst_111 = arith.constant dense<0.000000e+00> : vector<8x8xf32>
    %249 = tpu.matmul %247, %248, %cst_111 {dimension_numbers = #tpu.dot_dimension_numbers<[1], [1], [0], [0], [0, 0, 1, 0], [], []>} : vector<8x16xbf16>, vector<8x16xbf16>, vector<8x8xf32> -> vector<8x8xf32>
    %cst_112 = arith.constant 2.500000e-01 : f32
    %250 = vector.broadcast %cst_112 : f32 to vector<8x8xf32>
    %251 = arith.mulf %249, %250 : vector<8x8xf32>
    %cst_113 = arith.constant -1.000000e+30 : f32
    %252 = vector.broadcast %cst_113 : f32 to vector<8x8xf32>
    %253 = arith.select %8, %251, %252 : vector<8x8xi1>, vector<8x8xf32>
    %cst_114 = arith.constant dense<0xFF800000> : vector<8xf32>
    %254 = vector.multi_reduction <maximumf>, %253, %cst_114 [1] : vector<8x8xf32> to vector<8xf32>
    %255 = vector.shape_cast %254 : vector<8xf32> to vector<8x1xf32>
    %256 = vector.broadcast %255 : vector<8x1xf32> to vector<8x8xf32>
    %257 = arith.subf %253, %256 : vector<8x8xf32>
    %258 = math.exp %257 : vector<8x8xf32>
    %cst_115 = arith.constant dense<0.000000e+00> : vector<8xf32>
    %259 = vector.multi_reduction <add>, %258, %cst_115 [1] : vector<8x8xf32> to vector<8xf32>
    %260 = vector.shape_cast %259 : vector<8xf32> to vector<8x1xf32>
    %261 = tpu.reciprocal %260 {approx = true} : vector<8x1xf32> -> vector<8x1xf32>
    %262 = vector.broadcast %261 : vector<8x1xf32> to vector<8x8xf32>
    %263 = arith.mulf %258, %262 : vector<8x8xf32>
    %264 = arith.truncf %263 : vector<8x8xf32> to vector<8x8xbf16>
    %265 = arith.truncf %246 : vector<8x16xf32> to vector<8x16xbf16>
    %cst_116 = arith.constant dense<0.000000e+00> : vector<8x16xf32>
    %266 = tpu.matmul %264, %265, %cst_116 {dimension_numbers = #tpu.dot_dimension_numbers<[1], [0], [0], [1], [0, 0, 1, 1], [], []>} : vector<8x8xbf16>, vector<8x16xbf16>, vector<8x16xf32> -> vector<8x16xf32>
    %267 = vector.extract_strided_slice %243 {offsets = [0, 16], sizes = [8, 16], strides = [1, 1]} : vector<8x192xf32> to vector<8x16xf32>
    %268 = vector.extract_strided_slice %243 {offsets = [0, 80], sizes = [8, 16], strides = [1, 1]} : vector<8x192xf32> to vector<8x16xf32>
    %269 = vector.extract_strided_slice %243 {offsets = [0, 144], sizes = [8, 16], strides = [1, 1]} : vector<8x192xf32> to vector<8x16xf32>
    %270 = arith.truncf %267 : vector<8x16xf32> to vector<8x16xbf16>
    %271 = arith.truncf %268 : vector<8x16xf32> to vector<8x16xbf16>
    %cst_117 = arith.constant dense<0.000000e+00> : vector<8x8xf32>
    %272 = tpu.matmul %270, %271, %cst_117 {dimension_numbers = #tpu.dot_dimension_numbers<[1], [1], [0], [0], [0, 0, 1, 0], [], []>} : vector<8x16xbf16>, vector<8x16xbf16>, vector<8x8xf32> -> vector<8x8xf32>
    %cst_118 = arith.constant 2.500000e-01 : f32
    %273 = vector.broadcast %cst_118 : f32 to vector<8x8xf32>
    %274 = arith.mulf %272, %273 : vector<8x8xf32>
    %cst_119 = arith.constant -1.000000e+30 : f32
    %275 = vector.broadcast %cst_119 : f32 to vector<8x8xf32>
    %276 = arith.select %8, %274, %275 : vector<8x8xi1>, vector<8x8xf32>
    %cst_120 = arith.constant dense<0xFF800000> : vector<8xf32>
    %277 = vector.multi_reduction <maximumf>, %276, %cst_120 [1] : vector<8x8xf32> to vector<8xf32>
    %278 = vector.shape_cast %277 : vector<8xf32> to vector<8x1xf32>
    %279 = vector.broadcast %278 : vector<8x1xf32> to vector<8x8xf32>
    %280 = arith.subf %276, %279 : vector<8x8xf32>
    %281 = math.exp %280 : vector<8x8xf32>
    %cst_121 = arith.constant dense<0.000000e+00> : vector<8xf32>
    %282 = vector.multi_reduction <add>, %281, %cst_121 [1] : vector<8x8xf32> to vector<8xf32>
    %283 = vector.shape_cast %282 : vector<8xf32> to vector<8x1xf32>
    %284 = tpu.reciprocal %283 {approx = true} : vector<8x1xf32> -> vector<8x1xf32>
    %285 = vector.broadcast %284 : vector<8x1xf32> to vector<8x8xf32>
    %286 = arith.mulf %281, %285 : vector<8x8xf32>
    %287 = arith.truncf %286 : vector<8x8xf32> to vector<8x8xbf16>
    %288 = arith.truncf %269 : vector<8x16xf32> to vector<8x16xbf16>
    %cst_122 = arith.constant dense<0.000000e+00> : vector<8x16xf32>
    %289 = tpu.matmul %287, %288, %cst_122 {dimension_numbers = #tpu.dot_dimension_numbers<[1], [0], [0], [1], [0, 0, 1, 1], [], []>} : vector<8x8xbf16>, vector<8x16xbf16>, vector<8x16xf32> -> vector<8x16xf32>
    %290 = vector.extract_strided_slice %243 {offsets = [0, 32], sizes = [8, 16], strides = [1, 1]} : vector<8x192xf32> to vector<8x16xf32>
    %291 = vector.extract_strided_slice %243 {offsets = [0, 96], sizes = [8, 16], strides = [1, 1]} : vector<8x192xf32> to vector<8x16xf32>
    %292 = vector.extract_strided_slice %243 {offsets = [0, 160], sizes = [8, 16], strides = [1, 1]} : vector<8x192xf32> to vector<8x16xf32>
    %293 = arith.truncf %290 : vector<8x16xf32> to vector<8x16xbf16>
    %294 = arith.truncf %291 : vector<8x16xf32> to vector<8x16xbf16>
    %cst_123 = arith.constant dense<0.000000e+00> : vector<8x8xf32>
    %295 = tpu.matmul %293, %294, %cst_123 {dimension_numbers = #tpu.dot_dimension_numbers<[1], [1], [0], [0], [0, 0, 1, 0], [], []>} : vector<8x16xbf16>, vector<8x16xbf16>, vector<8x8xf32> -> vector<8x8xf32>
    %cst_124 = arith.constant 2.500000e-01 : f32
    %296 = vector.broadcast %cst_124 : f32 to vector<8x8xf32>
    %297 = arith.mulf %295, %296 : vector<8x8xf32>
    %cst_125 = arith.constant -1.000000e+30 : f32
    %298 = vector.broadcast %cst_125 : f32 to vector<8x8xf32>
    %299 = arith.select %8, %297, %298 : vector<8x8xi1>, vector<8x8xf32>
    %cst_126 = arith.constant dense<0xFF800000> : vector<8xf32>
    %300 = vector.multi_reduction <maximumf>, %299, %cst_126 [1] : vector<8x8xf32> to vector<8xf32>
    %301 = vector.shape_cast %300 : vector<8xf32> to vector<8x1xf32>
    %302 = vector.broadcast %301 : vector<8x1xf32> to vector<8x8xf32>
    %303 = arith.subf %299, %302 : vector<8x8xf32>
    %304 = math.exp %303 : vector<8x8xf32>
    %cst_127 = arith.constant dense<0.000000e+00> : vector<8xf32>
    %305 = vector.multi_reduction <add>, %304, %cst_127 [1] : vector<8x8xf32> to vector<8xf32>
    %306 = vector.shape_cast %305 : vector<8xf32> to vector<8x1xf32>
    %307 = tpu.reciprocal %306 {approx = true} : vector<8x1xf32> -> vector<8x1xf32>
    %308 = vector.broadcast %307 : vector<8x1xf32> to vector<8x8xf32>
    %309 = arith.mulf %304, %308 : vector<8x8xf32>
    %310 = arith.truncf %309 : vector<8x8xf32> to vector<8x8xbf16>
    %311 = arith.truncf %292 : vector<8x16xf32> to vector<8x16xbf16>
    %cst_128 = arith.constant dense<0.000000e+00> : vector<8x16xf32>
    %312 = tpu.matmul %310, %311, %cst_128 {dimension_numbers = #tpu.dot_dimension_numbers<[1], [0], [0], [1], [0, 0, 1, 1], [], []>} : vector<8x8xbf16>, vector<8x16xbf16>, vector<8x16xf32> -> vector<8x16xf32>
    %313 = vector.extract_strided_slice %243 {offsets = [0, 48], sizes = [8, 16], strides = [1, 1]} : vector<8x192xf32> to vector<8x16xf32>
    %314 = vector.extract_strided_slice %243 {offsets = [0, 112], sizes = [8, 16], strides = [1, 1]} : vector<8x192xf32> to vector<8x16xf32>
    %315 = vector.extract_strided_slice %243 {offsets = [0, 176], sizes = [8, 16], strides = [1, 1]} : vector<8x192xf32> to vector<8x16xf32>
    %316 = arith.truncf %313 : vector<8x16xf32> to vector<8x16xbf16>
    %317 = arith.truncf %314 : vector<8x16xf32> to vector<8x16xbf16>
    %cst_129 = arith.constant dense<0.000000e+00> : vector<8x8xf32>
    %318 = tpu.matmul %316, %317, %cst_129 {dimension_numbers = #tpu.dot_dimension_numbers<[1], [1], [0], [0], [0, 0, 1, 0], [], []>} : vector<8x16xbf16>, vector<8x16xbf16>, vector<8x8xf32> -> vector<8x8xf32>
    %cst_130 = arith.constant 2.500000e-01 : f32
    %319 = vector.broadcast %cst_130 : f32 to vector<8x8xf32>
    %320 = arith.mulf %318, %319 : vector<8x8xf32>
    %cst_131 = arith.constant -1.000000e+30 : f32
    %321 = vector.broadcast %cst_131 : f32 to vector<8x8xf32>
    %322 = arith.select %8, %320, %321 : vector<8x8xi1>, vector<8x8xf32>
    %cst_132 = arith.constant dense<0xFF800000> : vector<8xf32>
    %323 = vector.multi_reduction <maximumf>, %322, %cst_132 [1] : vector<8x8xf32> to vector<8xf32>
    %324 = vector.shape_cast %323 : vector<8xf32> to vector<8x1xf32>
    %325 = vector.broadcast %324 : vector<8x1xf32> to vector<8x8xf32>
    %326 = arith.subf %322, %325 : vector<8x8xf32>
    %327 = math.exp %326 : vector<8x8xf32>
    %cst_133 = arith.constant dense<0.000000e+00> : vector<8xf32>
    %328 = vector.multi_reduction <add>, %327, %cst_133 [1] : vector<8x8xf32> to vector<8xf32>
    %329 = vector.shape_cast %328 : vector<8xf32> to vector<8x1xf32>
    %330 = tpu.reciprocal %329 {approx = true} : vector<8x1xf32> -> vector<8x1xf32>
    %331 = vector.broadcast %330 : vector<8x1xf32> to vector<8x8xf32>
    %332 = arith.mulf %327, %331 : vector<8x8xf32>
    %333 = arith.truncf %332 : vector<8x8xf32> to vector<8x8xbf16>
    %334 = arith.truncf %315 : vector<8x16xf32> to vector<8x16xbf16>
    %cst_134 = arith.constant dense<0.000000e+00> : vector<8x16xf32>
    %335 = tpu.matmul %333, %334, %cst_134 {dimension_numbers = #tpu.dot_dimension_numbers<[1], [0], [0], [1], [0, 0, 1, 1], [], []>} : vector<8x8xbf16>, vector<8x16xbf16>, vector<8x16xf32> -> vector<8x16xf32>
    %336 = tpu.concatenate %266, %289, %312, %335 in 1 : vector<8x16xf32>, vector<8x16xf32>, vector<8x16xf32>, vector<8x16xf32> -> vector<8x64xf32>
    %337 = arith.truncf %336 : vector<8x64xf32> to vector<8x64xbf16>
    %c1_135 = arith.constant 1 : index
    %c0_136 = arith.constant 0 : index
    %c0_137 = arith.constant 0 : index
    %338 = vector.load %arg8[%c1_135, %c0_136, %c0_137] : memref<2x64x64xbf16, #tpu.memory_space<vmem>>, vector<1x64x64xbf16>
    %339 = vector.shape_cast %338 : vector<1x64x64xbf16> to vector<64x64xbf16>
    %cst_138 = arith.constant dense<0.000000e+00> : vector<8x64xf32>
    %340 = tpu.matmul %337, %339, %cst_138 {dimension_numbers = #tpu.dot_dimension_numbers<[1], [0], [0], [1], [0, 0, 1, 1], [], []>} : vector<8x64xbf16>, vector<64x64xbf16>, vector<8x64xf32> -> vector<8x64xf32>
    %c1_139 = arith.constant 1 : index
    %c0_140 = arith.constant 0 : index
    %c0_141 = arith.constant 0 : index
    %341 = vector.load %arg9[%c1_139, %c0_140, %c0_141] : memref<2x1x64xf32, #tpu.memory_space<vmem>>, vector<1x1x64xf32>
    %342 = vector.shape_cast %341 : vector<1x1x64xf32> to vector<1x64xf32>
    %343 = vector.broadcast %342 : vector<1x64xf32> to vector<8x64xf32>
    %344 = arith.addf %340, %343 : vector<8x64xf32>
    %c1_142 = arith.constant 1 : index
    %c0_143 = arith.constant 0 : index
    %c0_144 = arith.constant 0 : index
    %345 = vector.load %arg10[%c1_142, %c0_143, %c0_144] : memref<2x1x64xf32, #tpu.memory_space<vmem>>, vector<1x1x64xf32>
    %346 = vector.shape_cast %345 : vector<1x1x64xf32> to vector<1x64xf32>
    %347 = vector.broadcast %346 : vector<1x64xf32> to vector<8x64xf32>
    %348 = arith.mulf %344, %347 : vector<8x64xf32>
    %349 = arith.addf %209, %348 : vector<8x64xf32>
    %c1_145 = arith.constant 1 : index
    %c0_146 = arith.constant 0 : index
    %c0_147 = arith.constant 0 : index
    %350 = vector.load %arg11[%c1_145, %c0_146, %c0_147] : memref<2x1x64xf32, #tpu.memory_space<vmem>>, vector<1x1x64xf32>
    %351 = vector.shape_cast %350 : vector<1x1x64xf32> to vector<1x64xf32>
    %c1_148 = arith.constant 1 : index
    %c0_149 = arith.constant 0 : index
    %c0_150 = arith.constant 0 : index
    %352 = vector.load %arg12[%c1_148, %c0_149, %c0_150] : memref<2x1x64xf32, #tpu.memory_space<vmem>>, vector<1x1x64xf32>
    %353 = vector.shape_cast %352 : vector<1x1x64xf32> to vector<1x64xf32>
    %cst_151 = arith.constant dense<0.000000e+00> : vector<8xf32>
    %354 = vector.multi_reduction <add>, %349, %cst_151 [1] : vector<8x64xf32> to vector<8xf32>
    %355 = vector.shape_cast %354 : vector<8xf32> to vector<8x1xf32>
    %cst_152 = arith.constant 6.400000e+01 : f32
    %356 = vector.broadcast %cst_152 : f32 to vector<8x1xf32>
    %357 = arith.divf %355, %356 : vector<8x1xf32>
    %358 = vector.broadcast %357 : vector<8x1xf32> to vector<8x64xf32>
    %359 = arith.subf %349, %358 : vector<8x64xf32>
    %360 = arith.mulf %359, %359 : vector<8x64xf32>
    %cst_153 = arith.constant dense<0.000000e+00> : vector<8xf32>
    %361 = vector.multi_reduction <add>, %360, %cst_153 [1] : vector<8x64xf32> to vector<8xf32>
    %362 = vector.shape_cast %361 : vector<8xf32> to vector<8x1xf32>
    %cst_154 = arith.constant 6.400000e+01 : f32
    %363 = vector.broadcast %cst_154 : f32 to vector<8x1xf32>
    %364 = arith.divf %362, %363 : vector<8x1xf32>
    %365 = vector.broadcast %357 : vector<8x1xf32> to vector<8x64xf32>
    %366 = arith.subf %349, %365 : vector<8x64xf32>
    %cst_155 = arith.constant 9.99999997E-7 : f32
    %367 = vector.broadcast %cst_155 : f32 to vector<8x1xf32>
    %368 = arith.addf %364, %367 : vector<8x1xf32>
    %369 = math.rsqrt %368 : vector<8x1xf32>
    %370 = vector.broadcast %369 : vector<8x1xf32> to vector<8x64xf32>
    %371 = arith.mulf %366, %370 : vector<8x64xf32>
    %372 = vector.broadcast %351 : vector<1x64xf32> to vector<8x64xf32>
    %373 = arith.mulf %371, %372 : vector<8x64xf32>
    %374 = vector.broadcast %353 : vector<1x64xf32> to vector<8x64xf32>
    %375 = arith.addf %373, %374 : vector<8x64xf32>
    %376 = arith.truncf %375 : vector<8x64xf32> to vector<8x64xbf16>
    %c1_156 = arith.constant 1 : index
    %c0_157 = arith.constant 0 : index
    %c0_158 = arith.constant 0 : index
    %377 = vector.load %arg13[%c1_156, %c0_157, %c0_158] : memref<2x64x256xbf16, #tpu.memory_space<vmem>>, vector<1x64x256xbf16>
    %378 = vector.shape_cast %377 : vector<1x64x256xbf16> to vector<64x256xbf16>
    %cst_159 = arith.constant dense<0.000000e+00> : vector<8x256xf32>
    %379 = tpu.matmul %376, %378, %cst_159 {dimension_numbers = #tpu.dot_dimension_numbers<[1], [0], [0], [1], [0, 0, 1, 1], [], []>} : vector<8x64xbf16>, vector<64x256xbf16>, vector<8x256xf32> -> vector<8x256xf32>
    %c1_160 = arith.constant 1 : index
    %c0_161 = arith.constant 0 : index
    %c0_162 = arith.constant 0 : index
    %380 = vector.load %arg14[%c1_160, %c0_161, %c0_162] : memref<2x1x256xf32, #tpu.memory_space<vmem>>, vector<1x1x256xf32>
    %381 = vector.shape_cast %380 : vector<1x1x256xf32> to vector<1x256xf32>
    %382 = vector.broadcast %381 : vector<1x256xf32> to vector<8x256xf32>
    %383 = arith.addf %379, %382 : vector<8x256xf32>
    %c1_163 = arith.constant 1 : index
    %c0_164 = arith.constant 0 : index
    %c0_165 = arith.constant 0 : index
    %384 = vector.load %arg15[%c1_163, %c0_164, %c0_165] : memref<2x64x256xbf16, #tpu.memory_space<vmem>>, vector<1x64x256xbf16>
    %385 = vector.shape_cast %384 : vector<1x64x256xbf16> to vector<64x256xbf16>
    %cst_166 = arith.constant dense<0.000000e+00> : vector<8x256xf32>
    %386 = tpu.matmul %376, %385, %cst_166 {dimension_numbers = #tpu.dot_dimension_numbers<[1], [0], [0], [1], [0, 0, 1, 1], [], []>} : vector<8x64xbf16>, vector<64x256xbf16>, vector<8x256xf32> -> vector<8x256xf32>
    %c1_167 = arith.constant 1 : index
    %c0_168 = arith.constant 0 : index
    %c0_169 = arith.constant 0 : index
    %387 = vector.load %arg16[%c1_167, %c0_168, %c0_169] : memref<2x1x256xf32, #tpu.memory_space<vmem>>, vector<1x1x256xf32>
    %388 = vector.shape_cast %387 : vector<1x1x256xf32> to vector<1x256xf32>
    %389 = vector.broadcast %388 : vector<1x256xf32> to vector<8x256xf32>
    %390 = arith.addf %386, %389 : vector<8x256xf32>
    %391 = arith.negf %383 : vector<8x256xf32>
    %392 = math.exp %391 : vector<8x256xf32>
    %cst_170 = arith.constant 1.000000e+00 : f32
    %393 = vector.broadcast %cst_170 : f32 to vector<8x256xf32>
    %394 = arith.addf %393, %392 : vector<8x256xf32>
    %395 = arith.divf %393, %394 : vector<8x256xf32>
    %396 = arith.mulf %383, %395 : vector<8x256xf32>
    %397 = arith.mulf %396, %390 : vector<8x256xf32>
    %398 = arith.truncf %397 : vector<8x256xf32> to vector<8x256xbf16>
    %c1_171 = arith.constant 1 : index
    %c0_172 = arith.constant 0 : index
    %c0_173 = arith.constant 0 : index
    %399 = vector.load %arg17[%c1_171, %c0_172, %c0_173] : memref<2x256x64xbf16, #tpu.memory_space<vmem>>, vector<1x256x64xbf16>
    %400 = vector.shape_cast %399 : vector<1x256x64xbf16> to vector<256x64xbf16>
    %cst_174 = arith.constant dense<0.000000e+00> : vector<8x64xf32>
    %401 = tpu.matmul %398, %400, %cst_174 {dimension_numbers = #tpu.dot_dimension_numbers<[1], [0], [0], [1], [0, 0, 1, 1], [], []>} : vector<8x256xbf16>, vector<256x64xbf16>, vector<8x64xf32> -> vector<8x64xf32>
    %c1_175 = arith.constant 1 : index
    %c0_176 = arith.constant 0 : index
    %c0_177 = arith.constant 0 : index
    %402 = vector.load %arg18[%c1_175, %c0_176, %c0_177] : memref<2x1x64xf32, #tpu.memory_space<vmem>>, vector<1x1x64xf32>
    %403 = vector.shape_cast %402 : vector<1x1x64xf32> to vector<1x64xf32>
    %404 = vector.broadcast %403 : vector<1x64xf32> to vector<8x64xf32>
    %405 = arith.addf %401, %404 : vector<8x64xf32>
    %c1_178 = arith.constant 1 : index
    %c0_179 = arith.constant 0 : index
    %c0_180 = arith.constant 0 : index
    %406 = vector.load %arg19[%c1_178, %c0_179, %c0_180] : memref<2x1x64xf32, #tpu.memory_space<vmem>>, vector<1x1x64xf32>
    %407 = vector.shape_cast %406 : vector<1x1x64xf32> to vector<1x64xf32>
    %408 = vector.broadcast %407 : vector<1x64xf32> to vector<8x64xf32>
    %409 = arith.mulf %405, %408 : vector<8x64xf32>
    %410 = arith.addf %349, %409 : vector<8x64xf32>
    %411 = vector.extract_strided_slice %410 {offsets = [0, 0], sizes = [1, 64], strides = [1, 1]} : vector<8x64xf32> to vector<1x64xf32>
    %c0_181 = arith.constant 0 : index
    %c0_182 = arith.constant 0 : index
    %412 = vector.load %arg20[%c0_181, %c0_182] : memref<1x64xf32, #tpu.memory_space<vmem>>, vector<1x64xf32>
    %c0_183 = arith.constant 0 : index
    %c0_184 = arith.constant 0 : index
    %413 = vector.load %arg21[%c0_183, %c0_184] : memref<1x64xf32, #tpu.memory_space<vmem>>, vector<1x64xf32>
    %cst_185 = arith.constant dense<0.000000e+00> : vector<1xf32>
    %414 = vector.multi_reduction <add>, %411, %cst_185 [1] : vector<1x64xf32> to vector<1xf32>
    %415 = vector.shape_cast %414 : vector<1xf32> to vector<1x1xf32>
    %cst_186 = arith.constant 6.400000e+01 : f32
    %416 = vector.broadcast %cst_186 : f32 to vector<1x1xf32>
    %417 = arith.divf %415, %416 : vector<1x1xf32>
    %418 = vector.broadcast %417 : vector<1x1xf32> to vector<1x64xf32>
    %419 = arith.subf %411, %418 : vector<1x64xf32>
    %420 = arith.mulf %419, %419 : vector<1x64xf32>
    %cst_187 = arith.constant dense<0.000000e+00> : vector<1xf32>
    %421 = vector.multi_reduction <add>, %420, %cst_187 [1] : vector<1x64xf32> to vector<1xf32>
    %422 = vector.shape_cast %421 : vector<1xf32> to vector<1x1xf32>
    %cst_188 = arith.constant 6.400000e+01 : f32
    %423 = vector.broadcast %cst_188 : f32 to vector<1x1xf32>
    %424 = arith.divf %422, %423 : vector<1x1xf32>
    %425 = vector.broadcast %417 : vector<1x1xf32> to vector<1x64xf32>
    %426 = arith.subf %411, %425 : vector<1x64xf32>
    %cst_189 = arith.constant 9.99999997E-7 : f32
    %427 = vector.broadcast %cst_189 : f32 to vector<1x1xf32>
    %428 = arith.addf %424, %427 : vector<1x1xf32>
    %429 = math.rsqrt %428 : vector<1x1xf32>
    %430 = vector.broadcast %429 : vector<1x1xf32> to vector<1x64xf32>
    %431 = arith.mulf %426, %430 : vector<1x64xf32>
    %432 = arith.mulf %431, %412 : vector<1x64xf32>
    %433 = arith.addf %432, %413 : vector<1x64xf32>
    %434 = arith.truncf %433 : vector<1x64xf32> to vector<1x64xbf16>
    %c0_190 = arith.constant 0 : index
    %c0_191 = arith.constant 0 : index
    %435 = vector.load %arg22[%c0_190, %c0_191] : memref<64x512xbf16, #tpu.memory_space<vmem>>, vector<64x512xbf16>
    %cst_192 = arith.constant dense<0.000000e+00> : vector<1x512xf32>
    %436 = tpu.matmul %434, %435, %cst_192 {dimension_numbers = #tpu.dot_dimension_numbers<[1], [0], [0], [1], [0, 0, 1, 1], [], []>} : vector<1x64xbf16>, vector<64x512xbf16>, vector<1x512xf32> -> vector<1x512xf32>
    %c0_193 = arith.constant 0 : index
    %c0_194 = arith.constant 0 : index
    %437 = vector.load %arg23[%c0_193, %c0_194] : memref<1x512xf32, #tpu.memory_space<vmem>>, vector<1x512xf32>
    %438 = arith.addf %436, %437 : vector<1x512xf32>
    %439 = vector.shape_cast %438 : vector<1x512xf32> to vector<1x1x512xf32>
    %c0_195 = arith.constant 0 : index
    %c0_196 = arith.constant 0 : index
    %c0_197 = arith.constant 0 : index
    %440 = vector.load %arg24[%c0_195, %c0_196, %c0_197] : memref<1x1x512xf32, #tpu.memory_space<vmem>>, vector<1x1x512xf32>
    tpu.vector_store %arg24[%c0_195, %c0_196, %c0_197], %439 {strides = array<i32>} : memref<1x1x512xf32, #tpu.memory_space<vmem>>, vector<1x1x512xf32>,
    return
  }
  func.func @transform_0(%arg0: i32) -> (i32, i32, i32) {
    %c0_i32 = arith.constant 0 : i32
    %c0_i32_0 = arith.constant 0 : i32
    %c0_i32_1 = arith.constant 0 : i32
    return %arg0, %c0_i32, %c0_i32_0 : i32, i32, i32
  }
  func.func @transform_1(%arg0: i32) -> (i32, i32) {
    %c0_i32 = arith.constant 0 : i32
    %c0_i32_0 = arith.constant 0 : i32
    %c0_i32_1 = arith.constant 0 : i32
    return %c0_i32, %c0_i32_0 : i32, i32
  }
  func.func @transform_2(%arg0: i32) -> (i32, i32) {
    %c0_i32 = arith.constant 0 : i32
    %c0_i32_0 = arith.constant 0 : i32
    %c0_i32_1 = arith.constant 0 : i32
    return %c0_i32, %c0_i32_0 : i32, i32
  }
  func.func @transform_3(%arg0: i32) -> (i32, i32, i32) {
    %c0_i32 = arith.constant 0 : i32
    %c0_i32_0 = arith.constant 0 : i32
    %c0_i32_1 = arith.constant 0 : i32
    %c0_i32_2 = arith.constant 0 : i32
    return %c0_i32, %c0_i32_0, %c0_i32_1 : i32, i32, i32
  }
  func.func @transform_4(%arg0: i32) -> (i32, i32, i32) {
    %c0_i32 = arith.constant 0 : i32
    %c0_i32_0 = arith.constant 0 : i32
    %c0_i32_1 = arith.constant 0 : i32
    %c0_i32_2 = arith.constant 0 : i32
    return %c0_i32, %c0_i32_0, %c0_i32_1 : i32, i32, i32
  }
  func.func @transform_5(%arg0: i32) -> (i32, i32, i32) {
    %c0_i32 = arith.constant 0 : i32
    %c0_i32_0 = arith.constant 0 : i32
    %c0_i32_1 = arith.constant 0 : i32
    %c0_i32_2 = arith.constant 0 : i32
    return %c0_i32, %c0_i32_0, %c0_i32_1 : i32, i32, i32
  }
  func.func @transform_6(%arg0: i32) -> (i32, i32, i32) {
    %c0_i32 = arith.constant 0 : i32
    %c0_i32_0 = arith.constant 0 : i32
    %c0_i32_1 = arith.constant 0 : i32
    %c0_i32_2 = arith.constant 0 : i32
    return %c0_i32, %c0_i32_0, %c0_i32_1 : i32, i32, i32
  }
  func.func @transform_7(%arg0: i32) -> (i32, i32, i32) {
    %c0_i32 = arith.constant 0 : i32
    %c0_i32_0 = arith.constant 0 : i32
    %c0_i32_1 = arith.constant 0 : i32
    %c0_i32_2 = arith.constant 0 : i32
    return %c0_i32, %c0_i32_0, %c0_i32_1 : i32, i32, i32
  }
  func.func @transform_8(%arg0: i32) -> (i32, i32, i32) {
    %c0_i32 = arith.constant 0 : i32
    %c0_i32_0 = arith.constant 0 : i32
    %c0_i32_1 = arith.constant 0 : i32
    %c0_i32_2 = arith.constant 0 : i32
    return %c0_i32, %c0_i32_0, %c0_i32_1 : i32, i32, i32
  }
  func.func @transform_9(%arg0: i32) -> (i32, i32, i32) {
    %c0_i32 = arith.constant 0 : i32
    %c0_i32_0 = arith.constant 0 : i32
    %c0_i32_1 = arith.constant 0 : i32
    %c0_i32_2 = arith.constant 0 : i32
    return %c0_i32, %c0_i32_0, %c0_i32_1 : i32, i32, i32
  }
  func.func @transform_10(%arg0: i32) -> (i32, i32, i32) {
    %c0_i32 = arith.constant 0 : i32
    %c0_i32_0 = arith.constant 0 : i32
    %c0_i32_1 = arith.constant 0 : i32
    %c0_i32_2 = arith.constant 0 : i32
    return %c0_i32, %c0_i32_0, %c0_i32_1 : i32, i32, i32
  }
  func.func @transform_11(%arg0: i32) -> (i32, i32, i32) {
    %c0_i32 = arith.constant 0 : i32
    %c0_i32_0 = arith.constant 0 : i32
    %c0_i32_1 = arith.constant 0 : i32
    %c0_i32_2 = arith.constant 0 : i32
    return %c0_i32, %c0_i32_0, %c0_i32_1 : i32, i32, i32
  }
  func.func @transform_12(%arg0: i32) -> (i32, i32, i32) {
    %c0_i32 = arith.constant 0 : i32
    %c0_i32_0 = arith.constant 0 : i32
    %c0_i32_1 = arith.constant 0 : i32
    %c0_i32_2 = arith.constant 0 : i32
    return %c0_i32, %c0_i32_0, %c0_i32_1 : i32, i32, i32
  }
  func.func @transform_13(%arg0: i32) -> (i32, i32, i32) {
    %c0_i32 = arith.constant 0 : i32
    %c0_i32_0 = arith.constant 0 : i32
    %c0_i32_1 = arith.constant 0 : i32
    %c0_i32_2 = arith.constant 0 : i32
    return %c0_i32, %c0_i32_0, %c0_i32_1 : i32, i32, i32
  }
  func.func @transform_14(%arg0: i32) -> (i32, i32, i32) {
    %c0_i32 = arith.constant 0 : i32
    %c0_i32_0 = arith.constant 0 : i32
    %c0_i32_1 = arith.constant 0 : i32
    %c0_i32_2 = arith.constant 0 : i32
    return %c0_i32, %c0_i32_0, %c0_i32_1 : i32, i32, i32
  }
  func.func @transform_15(%arg0: i32) -> (i32, i32, i32) {
    %c0_i32 = arith.constant 0 : i32
    %c0_i32_0 = arith.constant 0 : i32
    %c0_i32_1 = arith.constant 0 : i32
    %c0_i32_2 = arith.constant 0 : i32
    return %c0_i32, %c0_i32_0, %c0_i32_1 : i32, i32, i32
  }
  func.func @transform_16(%arg0: i32) -> (i32, i32, i32) {
    %c0_i32 = arith.constant 0 : i32
    %c0_i32_0 = arith.constant 0 : i32
    %c0_i32_1 = arith.constant 0 : i32
    %c0_i32_2 = arith.constant 0 : i32
    return %c0_i32, %c0_i32_0, %c0_i32_1 : i32, i32, i32
  }
  func.func @transform_17(%arg0: i32) -> (i32, i32, i32) {
    %c0_i32 = arith.constant 0 : i32
    %c0_i32_0 = arith.constant 0 : i32
    %c0_i32_1 = arith.constant 0 : i32
    %c0_i32_2 = arith.constant 0 : i32
    return %c0_i32, %c0_i32_0, %c0_i32_1 : i32, i32, i32
  }
  func.func @transform_18(%arg0: i32) -> (i32, i32, i32) {
    %c0_i32 = arith.constant 0 : i32
    %c0_i32_0 = arith.constant 0 : i32
    %c0_i32_1 = arith.constant 0 : i32
    %c0_i32_2 = arith.constant 0 : i32
    return %c0_i32, %c0_i32_0, %c0_i32_1 : i32, i32, i32
  }
  func.func @transform_19(%arg0: i32) -> (i32, i32) {
    %c0_i32 = arith.constant 0 : i32
    %c0_i32_0 = arith.constant 0 : i32
    %c0_i32_1 = arith.constant 0 : i32
    return %c0_i32, %c0_i32_0 : i32, i32
  }
  func.func @transform_20(%arg0: i32) -> (i32, i32) {
    %c0_i32 = arith.constant 0 : i32
    %c0_i32_0 = arith.constant 0 : i32
    %c0_i32_1 = arith.constant 0 : i32
    return %c0_i32, %c0_i32_0 : i32, i32
  }
  func.func @transform_21(%arg0: i32) -> (i32, i32) {
    %c0_i32 = arith.constant 0 : i32
    %c0_i32_0 = arith.constant 0 : i32
    %c0_i32_1 = arith.constant 0 : i32
    return %c0_i32, %c0_i32_0 : i32, i32
  }
  func.func @transform_22(%arg0: i32) -> (i32, i32) {
    %c0_i32 = arith.constant 0 : i32
    %c0_i32_0 = arith.constant 0 : i32
    %c0_i32_1 = arith.constant 0 : i32
    return %c0_i32, %c0_i32_0 : i32, i32
  }
  func.func @transform_23(%arg0: i32) -> (i32, i32, i32) {
    %c0_i32 = arith.constant 0 : i32
    %c0_i32_0 = arith.constant 0 : i32
    %c0_i32_1 = arith.constant 0 : i32
    return %arg0, %c0_i32, %c0_i32_0 : i32, i32, i32
  }
}

</mosaic_0001>

<bundles_post_ra>
// kernel: dinov2_forward.1
= control target key start
LH: loop header
LB: loop body
LE: loop exit
PB: predicated region body
PF: predicated region fallthrough
CT: control target
= control target key end

     0   :  { %s4985_s0 = inlined_call_operand.vmem [shape: bf16[2,8,192], index: 0, kind: input, shape index: {}]   ;;  %s4986_s1 = inlined_call_operand.vmem [shape: bf16[192,64], index: 1, kind: input, shape index: {}]   ;;  %s4987_s2 = inlined_call_operand.vmem [shape: f32[8,64], index: 2, kind: input, shape index: {}]   ;;  %s4988_s3 = inlined_call_operand.vmem [shape: f32[2,1,64], index: 3, kind: input, shape index: {}]   ;;  %s4989_s4 = inlined_call_operand.vmem [shape: f32[2,1,64], index: 4, kind: input, shape index: {}]   ;;  %s4990_s5 = inlined_call_operand.vmem [shape: bf16[2,64,192], index: 5, kind: input, shape index: {}]   ;;  %s4991_s6 = inlined_call_operand.vmem [shape: f32[2,1,192], index: 6, kind: input, shape index: {}]   ;;  %s4992_s7 = inlined_call_operand.vmem [shape: bf16[2,64,64], index: 7, kind: input, shape index: {}]   ;;  %s4993_s8 = inlined_call_operand.vmem [shape: f32[2,1,64], index: 8, kind: input, shape index: {}]   ;;  %s4994_s9 = inlined_call_operand.vmem [shape: f32[2,1,64], index: 9, kind: input, shape index: {}]   ;;  %s4995_s10 = inlined_call_operand.vmem [shape: f32[2,1,64], index: 10, kind: input, shape index: {}]   ;;  %s4996_s11 = inlined_call_operand.vmem [shape: f32[2,1,64], index: 11, kind: input, shape index: {}]   ;;  %s4997_s12 = inlined_call_operand.vmem [shape: bf16[2,64,256], index: 12, kind: input, shape index: {}]   ;;  %s4998_s13 = inlined_call_operand.vmem [shape: f32[2,1,256], index: 13, kind: input, shape index: {}]   ;;  %s4999_s14 = inlined_call_operand.vmem [shape: bf16[2,64,256], index: 14, kind: input, shape index: {}]   ;;  %s5000_s15 = inlined_call_operand.vmem [shape: f32[2,1,256], index: 15, kind: input, shape index: {}]   ;;  %s5001_s16 = inlined_call_operand.vmem [shape: bf16[2,256,64], index: 16, kind: input, shape index: {}]   ;;  %s5002_s17 = inlined_call_operand.vmem [shape: f32[2,1,64], index: 17, kind: input, shape index: {}]   ;;  %s5003_s18 = inlined_call_operand.vmem [shape: f32[2,1,64], index: 18, kind: input, shape index: {}]   ;;  %s5004_s19 = inlined_call_operand.vmem [shape: f32[1,64], index: 19, kind: input, shape index: {}]   ;;  %s5005_s20 = inlined_call_operand.vmem [shape: f32[1,64], index: 20, kind: input, shape index: {}]   ;;  %s5006_s21 = inlined_call_operand.vmem [shape: bf16[64,512], index: 21, kind: input, shape index: {}]   ;;  %s5007_s22 = inlined_call_operand.vmem [shape: f32[1,512], index: 22, kind: input, shape index: {}]   ;;  %s5008_s23 = inlined_call_operand.vmem [shape: f32[2,1,512], index: 23, kind: output, shape index: {}]  }
   0x1   :  { %5031 = sst [smem:[#allocation4_spill]] %s4985_s0 }
   0x2   :  { %5032 = sst [smem:[#allocation5_spill]] %s4986_s1 }
   0x3   :  { %5033 = sst [smem:[#allocation6_spill]] %s4987_s2 }
   0x4   :  { %5034 = sst [smem:[#allocation7_spill]] %s4988_s3 }
   0x5   :  { %5035 = sst [smem:[#allocation8_spill]] %s4989_s4  ;;  %s4267_s4 = smov 0  }
   0x6   :  { %5036 = sst [smem:[#allocation9_spill]] %s4990_s5 }
   0x7   :  { %5037 = sst [smem:[#allocation10_spill]] %s4991_s6 }
   0x8   :  { %5038 = sst [smem:[#allocation11_spill]] %s4992_s7 }
   0x9   :  { %5039 = sst [smem:[#allocation12_spill]] %s5007_s22 }
   0xa   :  { %5040 = sst [smem:[#allocation13_spill]] %s5008_s23 }
   0xb LB: > { %5041 = sst [smem:[#allocation2_spill]] %s4134_s4  ;;  %s3444_s30 = sadd.s32 4294967295, %s4134_s4   ;;  %s4134_s4 = sphi %s4267_s4, %s33_s4  }
   0xc   : > { %p3448_p0 = scmp.ge.s32.totalorder %s4134_s4, 1  ;;  %p637_p1 = scmp.lt.s32.totalorder %s4134_s4, 3 }
   0xe   : > { %p638_p2 = pnand %p3448_p0, %p637_p1 }
  0x10   : > { %641 = sbr.rel (%p638_p2) target bundleno = 6705 (0x1a31), region = 112 }
  0x15   : > { %s5042_s5 = sld [smem:[#allocation5_spill]]  ;;  %v4136_v1 = vmov 0   ;;  %p700_p3 = scmp.lt.s32.totalorder %s3444_s30, 1  ;;  %vm814_vm0 = vcmask 523264   ;;  %v858_v46 = vlaneseq  ;;  %v4137_v48 = vmov 0.0  }
  0x16   : > { %818 = vmatprep.subr.bf16.mxu0 %v4136_v1  ;;  %987 = vmatprep.mubr.bf16.mxu1 %v4136_v1  ;;  %s5044_s29 = sld [smem:[#allocation4_spill]]  ;;  %vm4138_vm1 = vmmov 0   ;;  %s5023_s24 = smov 64   ;;  %vm1000_vm2 = vcmask 130048   ;;  %vm1066_vm3 = vcmask 1043456   ;;  %vm1049_vm5 = vcmask 64512  }
  0x17   : > { %s5063_s30 = smov (!%p700_p3, %s3444_s30), 1  ;;  %s5045_s7 = sld [smem:[#allocation6_spill]]  ;;  %v4372_v47 = vshrl.u32 %v858_v46, 7  ;;  %vm1460_vm6 = vcmask 261120   ;;  %vm1462_vm7 = vcmask 392192   ;;  %vm3137_vm8 = vcmask 516096  }
  0x18   : > { %5043 = sst [smem:[#allocation3_spill]] %s5063_s30  ;;  %s3694_s27 = sshll.u32 %s5063_s30, 3  ;;  %vm3388_vm9 = vcmp.lt.s32.totalorder %v858_v46, 512 }
  0x19   : > { %s5047_s2 = sld [smem:[#allocation7_spill]]  ;;  %v4377_v49 = vsub.s32 0, %v4372_v47  ;;  %v4392_v58 = vsub.s32 1, %v4372_v47  ;;  %s5019_s25 = smov 112  }
  0x1a   : > { %s5049_s0 = sld [smem:[#allocation10_spill]]  ;;  %s5024_s1 = smov 48  }
  0x1b   : > { %v3920_v0 = vld [vmem:[%s5042_s5 + $0x38] sm:$0xff]   ;;  %v3921_v2 = vld [vmem:[%s5042_s5 + $0x30] sm:$0xff]   ;;  %v3922_v3 = vld [vmem:[%s5042_s5 + $0x28] sm:$0xff]   ;;  %s5015_s26 = smov 16   ;;  %s5026_s6 = smov 32  }
  0x1c   : > { %819 = vmatpush1.bf16.msra.mxu0 %v3920_v0  ;;  %s704_s3 = scalar_lea.vmem %s5044_s29, %s3694_s27  ;;  %v3923_v4 = vld [vmem:[%s5042_s5 + $0x20] sm:$0xff]   ;;  %v3924_v5 = vld [vmem:[%s5042_s5 + $0x18] sm:$0xff]   ;;  %v3925_v8 = vld [vmem:[%s5042_s5 + $0x10] sm:$0xff]   ;;  %s5021_s27 = smov 96  }
  0x1d   : > { %820 = vmatprep.subr.bf16.mxu0 %v4136_v1  ;;  %v710_v6 = vld [vmem:[%s704_s3] sm:$0xff]  ;;  %v3926_v9 = vld [vmem:[%s5042_s5 + $0x8] sm:$0xff]   ;;  %v3928_v11 = vld [vmem:[%s5042_s5 + $0x58] sm:$0xff]   ;;  %s5046_s3 = sld [smem:[#allocation9_spill]]  ;;  %s5017_s28 = smov 80  }
  0x1e   : > { %v3453_v7 = vcombine.high %v710_v6, %v710_v6  ;;  %v3927_v10 = vld [vmem:[%s5042_s5] sm:$0xff]   ;;  %v3929_v12 = vld [vmem:[%s5042_s5 + $0x50] sm:$0xff]   ;;  %v3930_v13 = vld [vmem:[%s5042_s5 + $0x48] sm:$0xff]   ;;  %v3452_v15 = vcombine.low %v710_v6, %v710_v6  ;;  %s5051_s29 = smov 32   ;;  %s5053_s22 = smov 64  }
  0x1f   : > { %v3931_v14 = vld [vmem:[%s5042_s5 + $0x40] sm:$0xff]   ;;  %s5054_s30 = smov 96  }
  0x20   : > { %821 = vmatpush1.bf16.msra.mxu0 %v3921_v2  ;;  %3466 = vmatprep.mubr.msk.bf16.mxu0 %vm814_vm0, %v3453_v7  ;;  %v735_v16 = vld [vmem:[%s5045_s7] sm:$0xff]  ;;  %s5048_s7 = sld [smem:[#allocation8_spill]]  ;;  %v4407_v2 = vand.u32 127, %v858_v46 }
  0x21   : > { %822 = vmatprep.subr.bf16.mxu0 %v4136_v1  ;;  %v3467_v40 = vld [vmem:[%s5047_s2] ss:$0 sm:$0xff] }
  0x22   : > { %v900_v50 = vld [vmem:[%s5049_s0] sm:$0x3]  ;;  %vm860_vm4 = vcmp.lt.s32.totalorder %v4407_v2, 5 }
  0x23   : > { %v3934_v28 = vld [vmem:[%s5046_s3 + $0x34] ss:$8 sps:$4 sm:$0xff]   ;;  %v3936_v29 = vld [vmem:[%s5046_s3 + $0x30] ss:$8 sps:$4 sm:$0xff]   ;;  %v3937_v30 = vld [vmem:[%s5046_s3 + $0x24] ss:$8 sps:$4 sm:$0xff]   ;;  %v905_v51 = vrot.slane %v900_v50, %v4377_v49  ;;  %v909_v59 = vrot.slane %v900_v50, %v4392_v58 }
  0x24   : > { %823 = vmatpush1.bf16.msra.mxu0 %v3922_v3  ;;  %963 = vmatprep.subr.bf16.mxu1 %v3934_v28  ;;  %v3939_v31 = vld [vmem:[%s5046_s3 + $0x20] ss:$8 sps:$4 sm:$0xff]   ;;  %v3940_v32 = vld [vmem:[%s5046_s3 + $0x14] ss:$8 sps:$4 sm:$0xff]   ;;  %v3942_v33 = vld [vmem:[%s5046_s3 + $0x10] ss:$8 sps:$4 sm:$0xff]  }
  0x25   : > { %824 = vmatprep.subr.bf16.mxu0 %v4136_v1  ;;  %964 = vmatpush1.bf16.msra.mxu1 %v3936_v29  ;;  %v3943_v34 = vld [vmem:[%s5046_s3 + $0x4] ss:$8 sps:$4 sm:$0xff]   ;;  %v3945_v35 = vld [vmem:[%s5046_s3] ss:$8 sps:$4 sm:$0xff]  }
  0x26   : > { %965 = vmatprep.subr.bf16.mxu1 %v3937_v30  ;;  %v3468_v42 = vld [vmem:[%s5048_s7] ss:$0 sm:$0xff] }
  0x28   : > { %825 = vmatpush1.bf16.msra.mxu0 %v3923_v4 }
  0x29   : > { %826 = vmatprep.subr.bf16.mxu0 %v4136_v1  ;;  %966 = vmatpush1.bf16.msra.mxu1 %v3939_v31 }
  0x2a   : > { %967 = vmatprep.subr.bf16.mxu1 %v3940_v32 }
  0x2c   : > { %827 = vmatpush1.bf16.msra.mxu0 %v3924_v5 }
  0x2d   : > { %828 = vmatprep.subr.bf16.mxu0 %v4136_v1  ;;  %968 = vmatpush1.bf16.msra.mxu1 %v3942_v33 }
  0x2e   : > { %969 = vmatprep.subr.bf16.mxu1 %v3943_v34 }
  0x30   : > { %829 = vmatpush1.bf16.msra.mxu0 %v3925_v8 }
  0x31   : > { %830 = vmatprep.subr.bf16.mxu0 %v4136_v1  ;;  %970 = vmatpush1.bf16.msra.mxu1 %v3945_v35 }
  0x32   : > { %3781 = vmatprep.subr.bf16.mxu1 %v4137_v48 }
  0x34   : > { %831 = vmatpush1.bf16.msra.mxu0 %v3926_v9 }
  0x35   : > { %832 = vmatprep.subr.bf16.mxu0 %v4136_v1 }
  0x38   : > { %833 = vmatpush1.bf16.msra.mxu0 %v3927_v10 }
  0x39   : > { %842 = vmatprep.subr.bf16.mxu0 %v4136_v1 }
  0x3c   : > { %843 = vmatpush2.bf16.msra.mxu0 %v3928_v11 }
  0x3d   : > { %844 = vmatprep.subr.bf16.mxu0 %v4136_v1 }
  0x40   : > { %845 = vmatpush2.bf16.msra.mxu0 %v3929_v12 }
  0x41   : > { %846 = vmatprep.subr.bf16.mxu0 %v4136_v1 }
  0x44   : > { %847 = vmatpush2.bf16.msra.mxu0 %v3930_v13 }
  0x45   : > { %848 = vmatprep.subr.bf16.mxu0 %v4136_v1 }
  0x48   : > { %849 = vmatpush2.bf16.msra.mxu0 %v3931_v14 }
  0x49   : > { %3817 = vmatprep.subr.bf16.mxu0 %v4137_v48 }
  0x4b   : > { %851 = vmatmul.mubr.bf16.vlgmr.msra.gmra.mxu0 %v3452_v15 }
  0x4c   : > { %3819 = vmatprep.mubr.msk.bf16.mxu0 %vm4138_vm1, %v4137_v48 }
 0x10b   : > { %v852_v17 = vpop.f32.mrf.mxu0 }
 0x10c   : > { %v4334_v18 = vadd.f32 %v852_v17, %v735_v16 }
 0x10d   : > { %v854_v19 = vpop.f32.mrf.mxu0 }
 0x10e   : > { %v863_v20 = vsel %vm814_vm0, %v4334_v18, 0.0 }
 0x10f   : > { %v855_v21 = vpop.f32.mrf.mxu0  ;;  %864 = vadd.xlane.f32.xlu0 %v863_v20 }
 0x111   : > { %v856_v22 = vpop.f32.mrf.mxu0 }
 0x198   : > { %v865_v23 = vpop.xlane.xlu0 %864 }
 0x199   : > { %v867_v24 = vmul.f32 0.015625, %v865_v23 }
 0x19b   : > { %v868_v25 = vsub.f32 %v4334_v18, %v867_v24 }
 0x19d   : > { %v869_v26 = vmul.f32 %v868_v25, %v868_v25 }
 0x19f   : > { %v870_v27 = vsel %vm814_vm0, %v869_v26, 0.0 }
 0x1a0   : > { %871 = vadd.xlane.f32.xlu0 %v870_v27 }
 0x229   : > { %v872_v36 = vpop.xlane.xlu0 %871 }
 0x22a   : > { %v873_v37 = vmul.f32 0.015625, %v872_v36 }
 0x22c   : > { %v874_v38 = vadd.f32 1e-06, %v873_v37 }
 0x22e   : > { %4070 = vrsqrt.f32 %v874_v38 }
 0x23b   : > { %v4071_v39 = vpop.eup %4070 }
 0x23c   : > { %v876_v41 = vmul.f32 %v4071_v39, %v868_v25 }
 0x23e   : > { %v883_v43 = vmul.f32 %v3467_v40, %v876_v41 }
 0x240   : > { %v890_v44 = vadd.f32 %v3468_v42, %v883_v43 }
 0x242   : > { %v891_v45 = vpack.c.bf16 %v890_v44, %v890_v44 }
 0x244   : > { %3477 = vmatmul.mubr.msk.bf16.vlgmr.msra.gmra.mxu1 %vm814_vm0, %v891_v45 }
 0x245   : > { %3783 = vmatprep.mubr.msk.bf16.mxu1 %vm4138_vm1, %v4137_v48 }
 0x304   : > { %v989_v52 = vpop.f32.mrf.mxu1 }
 0x305   : > { %v990_v53 = vadd.f32 %v989_v52, %v905_v51 }
 0x306   : > { %v991_v54 = vpop.f32.mrf.mxu1 }
 0x307   : > { %v4387_v55 = vpack.c.bf16 %v990_v53, %v990_v53  ;;  %v992_v61 = vadd.f32 %v991_v54, %v909_v59 }
 0x308   : > { %v993_v56 = vpop.f32.mrf.mxu1 }
 0x309   : > { %998 = vrot.lane.b32.xlu1 %v4387_v55, %s5023_s24  ;;  %v4397_v63 = vpack.c.bf16 %v992_v61, %v992_v61  ;;  %s5056_s24 = smov 80  }
 0x30a   : > { %v994_v57 = vpop.f32.mrf.mxu1 }
 0x30b   : > { %v1068_v0 = vsel %vm1066_vm3, %v4397_v63, 0 }
 0x37b   : > { %v999_v60 = vpop.permute.xlu1 %998 }
 0x37c   : > { %v1005_v62 = vsel %vm1000_vm2, %v999_v60, 0 }
 0x37d   : > { %3782 = vmatpush3.bf16.xpose.msra.mxu1 %v1005_v62 }
 0x37e   : > { %3787 = vmatprep.subr.bf16.mxu1 %v4137_v48 }
 0x384   : > { %3784 = vmatmul.mubr.msk.bf16.vlgmr.msra.gmra.mxu1 %vm1000_vm2, %v4387_v55 }
 0x385   : > { %3788 = vmatpush3.bf16.msra.mxu1 %v1068_v0  ;;  %3789 = vmatprep.mubr.msk.bf16.mxu1 %vm4138_vm1, %v4137_v48 }
 0x386   : > { %3793 = vmatprep.subr.bf16.mxu1 %v4137_v48 }
 0x444   : > { %v1041_v3 = vpop.f32.mrf.mxu1 }
 0x445   : > { %v1047_v4 = vmul.f32 0.25, %v1041_v3 }
 0x446   : > { %v3785_v5 = vpop.f32.mrf.mxu1 }
 0x447   : > { %v1048_v6 = vsel %vm860_vm4, %v1047_v4, -1e+30 }
 0x448   : > { %v1044_v7 = vpop.f32.mrf.mxu1  ;;  %v1050_v8 = vsel %vm1049_vm5, %v1048_v6, -inf }
 0x449   : > { %1051 = vmax.xlane.f32.xlu1 %v1050_v8 }
 0x44a   : > { %v3786_v9 = vpop.f32.mrf.mxu1 }
 0x45a   : > { %1175 = vrot.lane.b32.xlu1 %v4397_v63, %s5019_s25 }
 0x4d2   : > { %v1052_v10 = vpop.xlane.xlu1 %1051 }
 0x4d3   : > { %v1053_v11 = vsub.f32 %v1048_v6, %v1052_v10 }
 0x4d5   : > { %v1054_v12 = vmul.f32 1.442695, %v1053_v11 }
 0x4d6   : > { %v1176_v22 = vpop.permute.xlu1 %1175 }
 0x4d7   : > { %4072 = vpow2.f32 %v1054_v12  ;;  %v1181_v24 = vsel %vm1066_vm3, %v1176_v22, 0 }
 0x4e4   : > { %v4073_v13 = vpop.eup %4072 }
 0x4e5   : > { %v1056_v14 = vsel %vm1049_vm5, %v4073_v13, 0.0 }
 0x4e6   : > { %1057 = vadd.xlane.f32.xlu0 %v1056_v14 }
 0x4fc   : > { %1112 = vrot.lane.b32.xlu0 %v4387_v55, %s5024_s1  ;;  %s5057_s1 = smov 16  }
 0x500   : > { %1110 = vrot.lane.b32.xlu0 %v4387_v55, %s5019_s25  ;;  %s5052_s25 = smov 48  }
 0x56f   : > { %v1058_v15 = vpop.xlane.xlu0 %1057 }
 0x570   : > { %4074 = vrcp.f32 %v1058_v15 }
 0x573   : > { %v1113_v19 = vpop.permute.xlu0 %1112 }
 0x574   : > { %v1118_v21 = vsel %vm1000_vm2, %v1113_v19, 0 }
 0x577   : > { %v1111_v23 = vpop.permute.xlu0 %1110 }
 0x57d   : > { %v4075_v16 = vpop.eup %4074 }
 0x57e   : > { %v1060_v17 = vmul.f32 %v4075_v16, %v4073_v13 }
 0x580   : > { %v1061_v20 = vpack.c.bf16 %v1060_v17, %v1060_v17 }
 0x582   : > { %3790 = vmatmul.mubr.msk.bf16.vlgmr.msra.gmra.mxu1 %vm1049_vm5, %v1061_v20 }
 0x583   : > { %3794 = vmatpush3.bf16.xpose.msra.mxu1 %v1118_v21  ;;  %3795 = vmatprep.mubr.msk.bf16.mxu1 %vm4138_vm1, %v4137_v48 }
 0x584   : > { %3799 = vmatprep.subr.bf16.mxu1 %v4137_v48 }
 0x58a   : > { %3796 = vmatmul.mubr.msk.bf16.vlgmr.msra.gmra.mxu1 %vm1000_vm2, %v1111_v23 }
 0x58b   : > { %3800 = vmatpush3.bf16.msra.mxu1 %v1181_v24  ;;  %3801 = vmatprep.mubr.msk.bf16.mxu1 %vm4138_vm1, %v4137_v48 }
 0x58c   : > { %3805 = vmatprep.subr.bf16.mxu1 %v4137_v48 }
 0x642   : > { %v4430_v25 = vpop.f32.mrf.mxu1 }
 0x644   : > { %v3791_v26 = vpop.f32.mrf.mxu1 }
 0x646   : > { %v1107_v27 = vpop.f32.mrf.mxu1 }
 0x648   : > { %v3792_v28 = vpop.f32.mrf.mxu1 }
 0x64a   : > { %v1154_v29 = vpop.f32.mrf.mxu1 }
 0x64b   : > { %v1160_v30 = vmul.f32 0.25, %v1154_v29 }
 0x64c   : > { %v3797_v31 = vpop.f32.mrf.mxu1 }
 0x64d   : > { %v1161_v32 = vsel %vm860_vm4, %v1160_v30, -1e+30 }
 0x64e   : > { %v1157_v33 = vpop.f32.mrf.mxu1  ;;  %v1162_v34 = vsel %vm1049_vm5, %v1161_v32, -inf }
 0x64f   : > { %1163 = vmax.xlane.f32.xlu0 %v1162_v34 }
 0x650   : > { %v3798_v35 = vpop.f32.mrf.mxu1 }
 0x665   : > { %1337 = vrot.lane.b32.xlu0 %v4387_v55, %s5015_s26 }
 0x6d8   : > { %v1164_v36 = vpop.xlane.xlu0 %1163 }
 0x6d9   : > { %v1165_v37 = vsub.f32 %v1161_v32, %v1164_v36 }
 0x6db   : > { %v1166_v38 = vmul.f32 1.442695, %v1165_v37 }
 0x6dc   : > { %v1338_v39 = vpop.permute.xlu0 %1337 }
 0x6dd   : > { %4076 = vpow2.f32 %v1166_v38  ;;  %v1343_v40 = vsel %vm1000_vm2, %v1338_v39, 0 }
 0x6de   : > { %3818 = vmatpush3.bf16.xpose.msra.mxu0 %v1343_v40 }
 0x6df   : > { %3829 = vmatprep.subr.bf16.mxu0 %v4137_v48 }
 0x6ea   : > { %v4077_v41 = vpop.eup %4076 }
 0x6eb   : > { %v1168_v42 = vsel %vm1049_vm5, %v4077_v41, 0.0 }
 0x6ec   : > { %1169 = vadd.xlane.f32.xlu1 %v1168_v42 }
 0x6fd   : > { %1225 = vrot.lane.b32.xlu1 %v4387_v55, %s5026_s6 }
 0x701   : > { %1223 = vrot.lane.b32.xlu1 %v4387_v55, %s5021_s27 }
 0x705   : > { %1335 = vrot.lane.b32.xlu1 %v4387_v55, %s5017_s28 }
 0x775   : > { %v1170_v43 = vpop.xlane.xlu1 %1169 }
 0x776   : > { %4078 = vrcp.f32 %v1170_v43 }
 0x779   : > { %v1226_v44 = vpop.permute.xlu1 %1225 }
 0x77a   : > { %v1231_v54 = vsel %vm1000_vm2, %v1226_v44, 0 }
 0x77d   : > { %v1224_v45 = vpop.permute.xlu1 %1223 }
 0x781   : > { %v1336_v50 = vpop.permute.xlu1 %1335 }
 0x782   : > { %3820 = vmatmul.mubr.msk.bf16.vlgmr.msra.gmra.mxu0 %vm1000_vm2, %v1336_v50 }
 0x783   : > { %v4079_v51 = vpop.eup %4078  ;;  %3837 = vmatprep.mubr.msk.bf16.mxu0 %vm4138_vm1, %v4137_v48 }
 0x784   : > { %v1172_v52 = vmul.f32 %v4079_v51, %v4077_v41 }
 0x786   : > { %v1173_v53 = vpack.c.bf16 %v1172_v52, %v1172_v52 }
 0x788   : > { %3802 = vmatmul.mubr.msk.bf16.vlgmr.msra.gmra.mxu1 %vm1049_vm5, %v1173_v53 }
 0x789   : > { %3806 = vmatpush3.bf16.xpose.msra.mxu1 %v1231_v54  ;;  %3807 = vmatprep.mubr.msk.bf16.mxu1 %vm4138_vm1, %v4137_v48 }
 0x78a   : > { %3811 = vmatprep.subr.bf16.mxu1 %v4137_v48 }
 0x790   : > { %3808 = vmatmul.mubr.msk.bf16.vlgmr.msra.gmra.mxu1 %vm1000_vm2, %v1224_v45 }
 0x791   : > { %3813 = vmatprep.mubr.msk.bf16.mxu1 %vm4138_vm1, %v4137_v48 }
 0x842   : > { %v1379_v55 = vpop.f32.mrf.mxu0 }
 0x843   : > { %v1385_v56 = vmul.f32 0.25, %v1379_v55 }
 0x844   : > { %v3821_v57 = vpop.f32.mrf.mxu0 }
 0x845   : > { %v1386_v59 = vsel %vm860_vm4, %v1385_v56, -1e+30 }
 0x846   : > { %v1382_v60 = vpop.f32.mrf.mxu0  ;;  %v1387_v61 = vsel %vm1049_vm5, %v1386_v59, -inf }
 0x847   : > { %1388 = vmax.xlane.f32.xlu0 %v1387_v61  ;;  %v3486_v60 = vld [vmem:[%s4993_s8] ss:$0 sm:$0xff] }
 0x848   : > { %v1217_v62 = vpop.f32.mrf.mxu1  ;;  %v3822_v0 = vpop.f32.mrf.mxu0 }
 0x84a   : > { %v3803_v3 = vpop.f32.mrf.mxu1 }
 0x84c   : > { %v1220_v4 = vpop.f32.mrf.mxu1 }
 0x84e   : > { %v3804_v5 = vpop.f32.mrf.mxu1 }
 0x850   : > { %v1267_v6 = vpop.f32.mrf.mxu1 }
 0x851   : > { %v1273_v7 = vmul.f32 0.25, %v1267_v6 }
 0x852   : > { %v3809_v8 = vpop.f32.mrf.mxu1 }
 0x853   : > { %v1274_v9 = vsel %vm860_vm4, %v1273_v7, -1e+30 }
 0x854   : > { %v1270_v10 = vpop.f32.mrf.mxu1  ;;  %v1275_v11 = vsel %vm1049_vm5, %v1274_v9, -inf }
 0x855   : > { %1276 = vmax.xlane.f32.xlu1 %v1275_v11 }
 0x856   : > { %v3810_v12 = vpop.f32.mrf.mxu1 }
 0x85d   : > { %1399 = vrot.lane.b32.xlu0 %v4397_v63, %s5017_s28  ;;  %s5050_s28 = sld [smem:[#allocation11_spill]] }
 0x863   : > { %v3946_v36 = vld [vmem:[%s5050_s28 + $0x18] sm:$0xff]   ;;  %v3947_v37 = vld [vmem:[%s5050_s28 + $0x10] sm:$0xff]   ;;  %v3948_v38 = vld [vmem:[%s5050_s28 + $0x8] sm:$0xff]  }
 0x864   : > { %3830 = vmatpush3.bf16.msra.mxu0 %v3946_v36  ;;  %v3949_v39 = vld [vmem:[%s5050_s28] sm:$0xff]  }
 0x865   : > { %3831 = vmatprep.subr.bf16.mxu0 %v4137_v48 }
 0x868   : > { %3832 = vmatpush3.bf16.msra.mxu0 %v3947_v37 }
 0x869   : > { %3833 = vmatprep.subr.bf16.mxu0 %v4137_v48 }
 0x86c   : > { %3834 = vmatpush3.bf16.msra.mxu0 %v3948_v38 }
 0x86d   : > { %3835 = vmatprep.subr.bf16.mxu0 %v4137_v48 }
 0x870   : > { %3836 = vmatpush3.bf16.msra.mxu0 %v3949_v39  ;;  %v3974_v39 = vld [vmem:[%s5001_s16 + $0x78] sm:$0xff]  }
 0x8d0   : > { %v1389_v13 = vpop.xlane.xlu0 %1388 }
 0x8d1   : > { %v1390_v14 = vsub.f32 %v1386_v59, %v1389_v13  ;;  %v3952_v13 = vld [vmem:[%s4997_s12 + $0x34] ss:$8 sps:$4 sm:$0xff]  }
 0x8d3   : > { %v1391_v15 = vmul.f32 1.442695, %v1390_v14  ;;  %v3950_v14 = vld [vmem:[%s4997_s12 + $0x30] ss:$8 sps:$4 sm:$0xff]  }
 0x8d4   : > { %v1400_v31 = vpop.permute.xlu0 %1399 }
 0x8d5   : > { %4080 = vpow2.f32 %v1391_v15  ;;  %v1405_v34 = vsel %vm1066_vm3, %v1400_v31, 0  ;;  %v3953_v15 = vld [vmem:[%s4999_s14 + $0x30] ss:$8 sps:$4 sm:$0xff]  }
 0x8de   : > { %v1277_v16 = vpop.xlane.xlu1 %1276 }
 0x8df   : > { %v1278_v17 = vsub.f32 %v1274_v9, %v1277_v16  ;;  %v3958_v16 = vld [vmem:[%s4997_s12 + $0x24] ss:$8 sps:$4 sm:$0xff]  }
 0x8e1   : > { %v1279_v19 = vmul.f32 1.442695, %v1278_v17  ;;  %v3961_v17 = vld [vmem:[%s4999_s14 + $0x24] ss:$8 sps:$4 sm:$0xff]  }
 0x8e2   : > { %v4081_v20 = vpop.eup %4080 }
 0x8e3   : > { %4082 = vpow2.f32 %v1279_v19  ;;  %v1393_v21 = vsel %vm1049_vm5, %v4081_v20, 0.0  ;;  %v3956_v19 = vld [vmem:[%s4997_s12 + $0x20] ss:$8 sps:$4 sm:$0xff]  }
 0x8e4   : > { %1394 = vadd.xlane.f32.xlu1 %v1393_v21  ;;  %v3964_v21 = vld [vmem:[%s4997_s12 + $0x14] ss:$8 sps:$4 sm:$0xff]  }
 0x8f0   : > { %v4083_v22 = vpop.eup %4082 }
 0x8f1   : > { %v1281_v23 = vsel %vm1049_vm5, %v4083_v22, 0.0 }
 0x8f2   : > { %1282 = vadd.xlane.f32.xlu1 %v1281_v23  ;;  %v3962_v23 = vld [vmem:[%s4997_s12 + $0x10] ss:$8 sps:$4 sm:$0xff]  }
 0x903   : > { %1287 = vrot.lane.b32.xlu1 %v4397_v63, %s5021_s27 }
 0x907   : > { %1448 = vrot.lane.b32.xlu1 %v1217_v62, %s5015_s26  ;;  %v3492_v62 = vld [vmem:[%s4994_s9] ss:$0 sm:$0xff]  ;;  %s5055_s26 = smov 112  }
 0x96d   : > { %v1395_v24 = vpop.xlane.xlu1 %1394 }
 0x97b   : > { %v1283_v26 = vpop.xlane.xlu1 %1282 }
 0x97c   : > { %4084 = vrcp.f32 %v1283_v26  ;;  %v3970_v26 = vld [vmem:[%s4997_s12 + $0x4] ss:$8 sps:$4 sm:$0xff]  }
 0x97d   : > { %4086 = vrcp.f32 %v1395_v24  ;;  %v3965_v24 = vld [vmem:[%s4999_s14 + $0x10] ss:$8 sps:$4 sm:$0xff]  }
 0x97f   : > { %v1288_v27 = vpop.permute.xlu1 %1287 }
 0x980   : > { %v1293_v28 = vsel %vm1066_vm3, %v1288_v27, 0  ;;  %v3973_v27 = vld [vmem:[%s4999_s14 + $0x4] ss:$8 sps:$4 sm:$0xff]  }
 0x981   : > { %3812 = vmatpush3.bf16.msra.mxu1 %v1293_v28  ;;  %v3968_v28 = vld [vmem:[%s4997_s12] ss:$8 sps:$4 sm:$0xff]  }
 0x982   : > { %3823 = vmatprep.subr.bf16.mxu1 %v4137_v48 }
 0x983   : > { %v1449_v52 = vpop.permute.xlu1 %1448 }
 0x984   : > { %v1459_v54 = vsel %vm1000_vm2, %v4430_v25, %v1449_v52  ;;  %v3983_v52 = vld [vmem:[%s5001_s16 + $0x18] sm:$0xff]  }
 0x989   : > { %v4085_v29 = vpop.eup %4084 }
 0x98a   : > { %v1285_v30 = vmul.f32 %v4085_v29, %v4083_v22  ;;  %v4087_v33 = vpop.eup %4086  ;;  %v3967_v22 = vld [vmem:[%s4999_s14 + $0x14] ss:$8 sps:$4 sm:$0xff]   ;;  %v3971_v29 = vld [vmem:[%s4999_s14] ss:$8 sps:$4 sm:$0xff]  }
 0x98b   : > { %v1397_v63 = vmul.f32 %v4087_v33, %v4081_v20  ;;  %v3959_v20 = vld [vmem:[%s4999_s14 + $0x20] ss:$8 sps:$4 sm:$0xff]  }
 0x98c   : > { %v1286_v32 = vpack.c.bf16 %v1285_v30, %v1285_v30 }
 0x98d   : > { %v1398_v35 = vpack.c.bf16 %v1397_v63, %v1397_v63 }
 0x98e   : > { %3814 = vmatmul.mubr.msk.bf16.vlgmr.msra.gmra.mxu1 %vm1049_vm5, %v1286_v32 }
 0x98f   : > { %3824 = vmatpush3.bf16.msra.mxu1 %v1405_v34  ;;  %3825 = vmatprep.mubr.msk.bf16.mxu1 %vm4138_vm1, %v4137_v48  ;;  %v3493_v34 = vld [vmem:[%s4995_s10] ss:$0 sm:$0xff] }
 0x990   : > { %1657 = vmatprep.subr.bf16.mxu1 %v3952_v13 }
 0x996   : > { %3826 = vmatmul.mubr.msk.bf16.vlgmr.msra.gmra.mxu1 %vm1049_vm5, %v1398_v35  ;;  %v3494_v35 = vld [vmem:[%s4996_s11] ss:$0 sm:$0xff] }
 0x997   : > { %1681 = vmatprep.mubr.bf16.mxu1 %v4136_v1  ;;  %1658 = vmatpush1.bf16.msra.mxu1 %v3950_v14 }
 0x998   : > { %1659 = vmatprep.subr.bf16.mxu1 %v3958_v16 }
 0x99b   : > { %1660 = vmatpush1.bf16.msra.mxu1 %v3956_v19 }
 0x99c   : > { %1661 = vmatprep.subr.bf16.mxu1 %v3964_v21 }
 0x99f   : > { %1662 = vmatpush1.bf16.msra.mxu1 %v3962_v23 }
 0x9a0   : > { %1663 = vmatprep.subr.bf16.mxu1 %v3970_v26 }
 0x9a3   : > { %1664 = vmatpush1.bf16.msra.mxu1 %v3968_v28 }
 0x9a4   : > { %3716 = vmatprep.subr.bf16.mxu1 %v3974_v39 }
 0xa4e   : > { %v1329_v40 = vpop.f32.mrf.mxu1 }
 0xa4f   : > { %1452 = vrot.lane.b32.xlu1 %v1329_v40, %s5051_s29  ;;  %v3975_v40 = vld [vmem:[%s5001_s16 + $0x38] sm:$0xff]  }
 0xa50   : > { %v3815_v41 = vpop.f32.mrf.mxu1 }
 0xa51   : > { %v3976_v41 = vld [vmem:[%s5001_s16 + $0x70] sm:$0xff]  }
 0xa52   : > { %v1332_v42 = vpop.f32.mrf.mxu1 }
 0xa53   : > { %v3977_v42 = vld [vmem:[%s5001_s16 + $0x30] sm:$0xff]  }
 0xa54   : > { %v3816_v43 = vpop.f32.mrf.mxu1 }
 0xa55   : > { %v3978_v43 = vld [vmem:[%s5001_s16 + $0x68] sm:$0xff]  }
 0xa56   : > { %v1441_v44 = vpop.f32.mrf.mxu1 }
 0xa57   : > { %1456 = vrot.lane.b32.xlu1 %v1441_v44, %s5052_s25  ;;  %v3979_v44 = vld [vmem:[%s5001_s16 + $0x28] sm:$0xff]  }
 0xa58   : > { %v3827_v45 = vpop.f32.mrf.mxu1 }
 0xa59   : > { %v3980_v45 = vld [vmem:[%s5001_s16 + $0x60] sm:$0xff]  }
 0xa5a   : > { %v1444_v50 = vpop.f32.mrf.mxu1 }
 0xa5b   : > { %v3981_v50 = vld [vmem:[%s5001_s16 + $0x20] sm:$0xff]  }
 0xa5c   : > { %v3828_v51 = vpop.f32.mrf.mxu1 }
 0xa5d   : > { %v3982_v51 = vld [vmem:[%s5001_s16 + $0x58] sm:$0xff]  }
 0xac1   : > { %v1453_v53 = vpop.permute.xlu1 %1452 }
 0xac2   : > { %v1461_v55 = vsel %vm1460_vm6, %v1459_v54, %v1453_v53  ;;  %v3984_v53 = vld [vmem:[%s5001_s16 + $0x50] sm:$0xff]  }
 0xac3   : > { %v3985_v54 = vld [vmem:[%s5001_s16 + $0x10] sm:$0xff]  }
 0xac9   : > { %v1457_v56 = vpop.permute.xlu1 %1456 }
 0xaca   : > { %v1463_v57 = vsel %vm1462_vm7, %v1461_v55, %v1457_v56  ;;  %v3986_v55 = vld [vmem:[%s5001_s16 + $0x48] sm:$0xff]  }
 0xacb   : > { %v1464_v59 = vpack.c.bf16 %v1463_v57, %v1463_v57  ;;  %v3987_v56 = vld [vmem:[%s5001_s16 + $0x8] sm:$0xff]   ;;  %v3988_v57 = vld [vmem:[%s5001_s16 + $0x40] sm:$0xff]  }
 0xacd   : > { %3838 = vmatmul.mubr.msk.bf16.vlgmr.msra.gmra.mxu0 %vm814_vm0, %v1464_v59  ;;  %v3989_v59 = vld [vmem:[%s5001_s16] sm:$0xff]  }
 0xace   : > { %1782 = vmatprep.mubr.bf16.mxu0 %v4136_v1 }
 0xb8d   : > { %v1541_v61 = vpop.f32.mrf.mxu0 }
 0xb8e   : > { %v1542_v25 = vadd.f32 %v3486_v60, %v1541_v61  ;;  %v1594_v60 = vld [vmem:[%s4998_s13] sm:$0x3] }
 0xb8f   : > { %v3839_v0 = vpop.f32.mrf.mxu0  ;;  %v1599_v61 = vrot.slane %v1594_v60, %v4377_v49 }
 0xb90   : > { %v1554_v3 = vmul.f32 %v3492_v62, %v1542_v25  ;;  %v1603_v62 = vrot.slane %v1594_v60, %v4392_v58 }
 0xb91   : > { %v1544_v4 = vpop.f32.mrf.mxu0 }
 0xb92   : > { %v4508_v5 = vadd.f32 %v1554_v3, %v4334_v18  ;;  %v3955_v18 = vld [vmem:[%s4999_s14 + $0x34] ss:$8 sps:$4 sm:$0xff]  }
 0xb93   : > { %v3840_v6 = vpop.f32.mrf.mxu0  ;;  %1758 = vmatprep.subr.bf16.mxu0 %v3955_v18 }
 0xb94   : > { %v1558_v7 = vsel %vm814_vm0, %v4508_v5, 0.0  ;;  %1759 = vmatpush1.bf16.msra.mxu0 %v3953_v15 }
 0xb95   : > { %1559 = vadd.xlane.f32.xlu0 %v1558_v7  ;;  %1760 = vmatprep.subr.bf16.mxu0 %v3961_v17  ;;  %v1698_v17 = vld [vmem:[%s5000_s15] sm:$0x3] }
 0xb96   : > { %v1703_v19 = vrot.slane %v1698_v17, %v4377_v49 }
 0xb98   : > { %1761 = vmatpush1.bf16.msra.mxu0 %v3959_v20  ;;  %v1707_v20 = vrot.slane %v1698_v17, %v4392_v58 }
 0xb99   : > { %1762 = vmatprep.subr.bf16.mxu0 %v3967_v22 }
 0xb9c   : > { %1763 = vmatpush1.bf16.msra.mxu0 %v3965_v24 }
 0xb9d   : > { %1764 = vmatprep.subr.bf16.mxu0 %v3973_v27 }
 0xba0   : > { %1765 = vmatpush1.bf16.msra.mxu0 %v3971_v29 }
 0xc1e   : > { %v1560_v8 = vpop.xlane.xlu0 %1559 }
 0xc1f   : > { %v1561_v9 = vmul.f32 0.015625, %v1560_v8 }
 0xc21   : > { %v1562_v10 = vsub.f32 %v4508_v5, %v1561_v9 }
 0xc23   : > { %v1563_v11 = vmul.f32 %v1562_v10, %v1562_v10 }
 0xc25   : > { %v1564_v12 = vsel %vm814_vm0, %v1563_v11, 0.0 }
 0xc26   : > { %1565 = vadd.xlane.f32.xlu1 %v1564_v12 }
 0xcaf   : > { %v1566_v30 = vpop.xlane.xlu1 %1565 }
 0xcb0   : > { %v1567_v31 = vmul.f32 0.015625, %v1566_v30 }
 0xcb2   : > { %v1568_v32 = vadd.f32 1e-06, %v1567_v31 }
 0xcb4   : > { %4088 = vrsqrt.f32 %v1568_v32 }
 0xcc1   : > { %v4089_v33 = vpop.eup %4088 }
 0xcc2   : > { %v1570_v63 = vmul.f32 %v4089_v33, %v1562_v10  ;;  %v3515_v33 = vld [vmem:[%s5002_s17] ss:$0 sm:$0xff] }
 0xcc4   : > { %v1577_v36 = vmul.f32 %v3493_v34, %v1570_v63 }
 0xcc6   : > { %v1584_v37 = vadd.f32 %v3494_v35, %v1577_v36  ;;  %v3532_v35 = vld [vmem:[%s5003_s18] ss:$0 sm:$0xff] }
 0xcc8   : > { %v1585_v38 = vpack.c.bf16 %v1584_v37, %v1584_v37 }
 0xcca   : > { %3503 = vmatmul.mubr.msk.bf16.vlgmr.msra.gmra.mxu1 %vm814_vm0, %v1585_v38  ;;  %3512 = vmatmul.mubr.msk.bf16.vlgmr.msra.gmra.mxu0 %vm814_vm0, %v1585_v38 }
 0xccb   : > { %2122 = vmatprep.mubr.bf16.mxu0 %v4136_v1  ;;  %3717 = vmatpush3.bf16.msra.mxu1 %v3975_v40 }
 0xccc   : > { %3718 = vmatprep.subr.bf16.mxu1 %v3976_v41 }
 0xccf   : > { %3719 = vmatpush3.bf16.msra.mxu1 %v3977_v42 }
 0xcd0   : > { %3720 = vmatprep.subr.bf16.mxu1 %v3978_v43 }
 0xcd3   : > { %3721 = vmatpush3.bf16.msra.mxu1 %v3979_v44 }
 0xcd4   : > { %3722 = vmatprep.subr.bf16.mxu1 %v3980_v45 }
 0xcd7   : > { %3723 = vmatpush3.bf16.msra.mxu1 %v3981_v50 }
 0xcd8   : > { %3724 = vmatprep.subr.bf16.mxu1 %v3982_v51  ;;  %v3992_v51 = vld [vmem:[%s5046_s3 + $0x74] ss:$8 sps:$4 sm:$0xff]  }
 0xcd9   : > { %2098 = vmatprep.subr.bf16.mxu0 %v3992_v51 }
 0xcdb   : > { %3725 = vmatpush3.bf16.msra.mxu1 %v3983_v52  ;;  %v3995_v52 = vld [vmem:[%s5046_s3 + $0x64] ss:$8 sps:$4 sm:$0xff]  }
 0xcdc   : > { %3726 = vmatprep.subr.bf16.mxu1 %v3984_v53  ;;  %v3993_v53 = vld [vmem:[%s5046_s3 + $0x60] ss:$8 sps:$4 sm:$0xff]  }
 0xcdf   : > { %3727 = vmatpush3.bf16.msra.mxu1 %v3985_v54  ;;  %v3998_v54 = vld [vmem:[%s5046_s3 + $0x54] ss:$8 sps:$4 sm:$0xff]  }
 0xce0   : > { %3728 = vmatprep.subr.bf16.mxu1 %v3986_v55  ;;  %v3996_v55 = vld [vmem:[%s5046_s3 + $0x50] ss:$8 sps:$4 sm:$0xff]  }
 0xce3   : > { %3729 = vmatpush3.bf16.msra.mxu1 %v3987_v56  ;;  %v4001_v56 = vld [vmem:[%s5046_s3 + $0x44] ss:$8 sps:$4 sm:$0xff]  }
 0xce4   : > { %3730 = vmatprep.subr.bf16.mxu1 %v3988_v57  ;;  %v3999_v57 = vld [vmem:[%s5046_s3 + $0x40] ss:$8 sps:$4 sm:$0xff]  }
 0xce7   : > { %3731 = vmatpush3.bf16.msra.mxu1 %v3989_v59 }
 0xce8   : > { %3847 = vmatprep.subr.bf16.mxu1 %v4137_v48 }
 0xd8a   : > { %v1683_v25 = vpop.f32.mrf.mxu1  ;;  %v1784_v0 = vpop.f32.mrf.mxu0 }
 0xd8b   : > { %v1684_v3 = vadd.f32 %v1683_v25, %v1599_v61  ;;  %v1785_v24 = vadd.f32 %v1784_v0, %v1703_v19  ;;  %v3535_v25 = vld [vmem:[%s5047_s2 + $0x1] ss:$0 sm:$0xff] }
 0xd8c   : > { %v1685_v4 = vpop.f32.mrf.mxu1  ;;  %v1786_v6 = vpop.f32.mrf.mxu0 }
 0xd8d   : > { %v3513_v7 = vmul.f32 -1.442695, %v1684_v3  ;;  %v1686_v8 = vadd.f32 %v1685_v4, %v1603_v62  ;;  %v1787_v27 = vadd.f32 %v1786_v6, %v1707_v20 }
 0xd8e   : > { %v1687_v9 = vpop.f32.mrf.mxu1  ;;  %v1788_v10 = vpop.f32.mrf.mxu0 }
 0xd8f   : > { %4090 = vpow2.f32 %v3513_v7  ;;  %v3514_v11 = vmul.f32 -1.442695, %v1686_v8 }
 0xd90   : > { %v1688_v12 = vpop.f32.mrf.mxu1  ;;  %v1789_v13 = vpop.f32.mrf.mxu0 }
 0xd91   : > { %4092 = vpow2.f32 %v3514_v11 }
 0xd9c   : > { %v4091_v18 = vpop.eup %4090 }
 0xd9d   : > { %v1797_v14 = vadd.f32 1.0, %v4091_v18 }
 0xd9e   : > { %v4093_v15 = vpop.eup %4092 }
 0xd9f   : > { %4094 = vrcp.f32 %v1797_v14  ;;  %v1798_v16 = vadd.f32 1.0, %v4093_v15 }
 0xda1   : > { %4096 = vrcp.f32 %v1798_v16 }
 0xdac   : > { %v4095_v21 = vpop.eup %4094 }
 0xdad   : > { %v1803_v22 = vmul.f32 %v4095_v21, %v1684_v3  ;;  %v3536_v3 = vld [vmem:[%s5048_s7 + $0x1] ss:$0 sm:$0xff] }
 0xdae   : > { %v4097_v23 = vpop.eup %4096 }
 0xdaf   : > { %v1804_v26 = vmul.f32 %v4097_v23, %v1686_v8  ;;  %v1805_v28 = vmul.f32 %v1803_v22, %v1785_v24  ;;  %v3545_v8 = vld [vmem:[%s5049_s0 + $0x2] sm:$0x3] }
 0xdb0   : > { %v2040_v9 = vrot.slane %v3545_v8, %v4377_v49  ;;  %v2044_v10 = vrot.slane %v3545_v8, %v4392_v58 }
 0xdb1   : > { %v1806_v29 = vmul.f32 %v1804_v26, %v1787_v27  ;;  %v1807_v31 = vpack.c.bf16 %v1805_v28, %v1805_v28 }
 0xdb3   : > { %v1808_v30 = vpack.c.bf16 %v1806_v29, %v1806_v29 }
 0xdb5   : > { %1976 = vmatprep.mubr.bf16.mxu1 %v1808_v30 }
 0xdb6   : > { %1977 = vmatmul.mubr.bf16.vlgmr.msra.gmra.mxu1 %v1807_v31 }
 0xdb7   : > { %3849 = vmatprep.mubr.msk.bf16.mxu1 %vm4138_vm1, %v4137_v48 }
 0xe76   : > { %v3732_v32 = vpop.f32.mrf.mxu1 }
 0xe78   : > { %v3733_v34 = vpop.f32.mrf.mxu1 }
 0xe79   : > { %v3734_v63 = vadd.f32 %v3733_v34, %v3732_v32 }
 0xe7a   : > { %v3735_v36 = vpop.f32.mrf.mxu1 }
 0xe7b   : > { %v1979_v37 = vadd.f32 %v3734_v63, %v3515_v33 }
 0xe7c   : > { %v3736_v38 = vpop.f32.mrf.mxu1 }
 0xe7d   : > { %v1991_v39 = vmul.f32 %v3532_v35, %v1979_v37 }
 0xe7f   : > { %v4639_v40 = vadd.f32 %v1991_v39, %v4508_v5  ;;  %v3990_v5 = vld [vmem:[%s5046_s3 + $0x70] ss:$8 sps:$4 sm:$0xff]  }
 0xe80   : > { %2099 = vmatpush1.bf16.msra.mxu0 %v3990_v5 }
 0xe81   : > { %v1997_v41 = vsel %vm814_vm0, %v4639_v40, 0.0  ;;  %2100 = vmatprep.subr.bf16.mxu0 %v3995_v52 }
 0xe82   : > { %1998 = vadd.xlane.f32.xlu0 %v1997_v41 }
 0xe84   : > { %2101 = vmatpush1.bf16.msra.mxu0 %v3993_v53 }
 0xe85   : > { %2102 = vmatprep.subr.bf16.mxu0 %v3998_v54 }
 0xe88   : > { %2103 = vmatpush1.bf16.msra.mxu0 %v3996_v55 }
 0xe89   : > { %2104 = vmatprep.subr.bf16.mxu0 %v4001_v56 }
 0xe8c   : > { %2105 = vmatpush1.bf16.msra.mxu0 %v3999_v57 }
 0xe8d   : > { %3841 = vmatprep.subr.bf16.mxu0 %v4137_v48 }
 0xf0b   : > { %v1999_v42 = vpop.xlane.xlu0 %1998 }
 0xf0c   : > { %v2000_v43 = vmul.f32 0.015625, %v1999_v42 }
 0xf0e   : > { %v2001_v44 = vsub.f32 %v4639_v40, %v2000_v43 }
 0xf10   : > { %v2002_v45 = vmul.f32 %v2001_v44, %v2001_v44 }
 0xf12   : > { %v2003_v50 = vsel %vm814_vm0, %v2002_v45, 0.0 }
 0xf13   : > { %2004 = vadd.xlane.f32.xlu0 %v2003_v50 }
 0xf9c   : > { %v2005_v59 = vpop.xlane.xlu0 %2004 }
 0xf9d   : > { %v2006_v60 = vmul.f32 0.015625, %v2005_v59 }
 0xf9f   : > { %v2007_v61 = vadd.f32 1e-06, %v2006_v60 }
 0xfa1   : > { %4098 = vrsqrt.f32 %v2007_v61 }
 0xfae   : > { %v4099_v62 = vpop.eup %4098 }
 0xfaf   : > { %v2009_v0 = vmul.f32 %v4099_v62, %v2001_v44 }
 0xfb1   : > { %v2016_v4 = vmul.f32 %v3535_v25, %v2009_v0 }
 0xfb3   : > { %v2023_v6 = vadd.f32 %v3536_v3, %v2016_v4 }
 0xfb5   : > { %v2024_v7 = vpack.c.bf16 %v2023_v6, %v2023_v6 }
 0xfb7   : > { %3554 = vmatmul.mubr.msk.bf16.vlgmr.msra.gmra.mxu0 %vm814_vm0, %v2024_v7 }
 0xfb8   : > { %3843 = vmatprep.mubr.msk.bf16.mxu0 %vm4138_vm1, %v4137_v48 }
0x1077   : > { %v2124_v11 = vpop.f32.mrf.mxu0 }
0x1078   : > { %v2125_v12 = vadd.f32 %v2124_v11, %v2040_v9 }
0x1079   : > { %v2126_v13 = vpop.f32.mrf.mxu0 }
0x107a   : > { %v2131_v18 = vpack.c.bf16 %v2125_v12, %v2125_v12  ;;  %v2127_v14 = vadd.f32 %v2126_v13, %v2044_v10 }
0x107b   : > { %v2128_v15 = vpop.f32.mrf.mxu0 }
0x107c   : > { %v4684_v16 = vpack.c.bf16 %v2127_v14, %v2127_v14  ;;  %2244 = vrot.lane.b32.xlu0 %v2131_v18, %s5052_s25  ;;  %2133 = vrot.lane.b32.xlu1 %v2131_v18, %s5053_s22 }
0x107d   : > { %v2129_v17 = vpop.f32.mrf.mxu0 }
0x107e   : > { %v2200_v19 = vsel %vm1066_vm3, %v4684_v16, 0 }
0x107f   : > { %3848 = vmatpush3.bf16.msra.mxu1 %v2200_v19 }
0x1080   : > { %2355 = vrot.lane.b32.xlu0 %v2131_v18, %s5054_s30  ;;  %2242 = vrot.lane.b32.xlu1 %v2131_v18, %s5055_s26 }
0x1081   : > { %3859 = vmatprep.subr.bf16.mxu1 %v4137_v48 }
0x1084   : > { %2467 = vrot.lane.b32.xlu0 %v2131_v18, %s5056_s24  ;;  %2357 = vrot.lane.b32.xlu1 %v2131_v18, %s5051_s29 }
0x1088   : > { %2469 = vrot.lane.b32.xlu1 %v2131_v18, %s5057_s1 }
0x10ee   : > { %v2134_v20 = vpop.permute.xlu1 %2133  ;;  %v2245_v22 = vpop.permute.xlu0 %2244 }
0x10ef   : > { %v2139_v21 = vsel %vm1000_vm2, %v2134_v20, 0  ;;  %v2250_v24 = vsel %vm1000_vm2, %v2245_v22, 0 }
0x10f0   : > { %3842 = vmatpush3.bf16.xpose.msra.mxu0 %v2139_v21 }
0x10f1   : > { %3853 = vmatprep.subr.bf16.mxu0 %v4137_v48 }
0x10f2   : > { %v2243_v23 = vpop.permute.xlu1 %2242  ;;  %v2356_v29 = vpop.permute.xlu0 %2355 }
0x10f6   : > { %v2358_v26 = vpop.permute.xlu1 %2357  ;;  %v2468_v31 = vpop.permute.xlu0 %2467 }
0x10f7   : > { %3844 = vmatmul.mubr.msk.bf16.vlgmr.msra.gmra.mxu0 %vm1000_vm2, %v2131_v18  ;;  %v2363_v27 = vsel %vm1000_vm2, %v2358_v26, 0 }
0x10f8   : > { %3854 = vmatpush3.bf16.xpose.msra.mxu0 %v2250_v24  ;;  %3855 = vmatprep.mubr.msk.bf16.mxu0 %vm4138_vm1, %v4137_v48 }
0x10f9   : > { %3865 = vmatprep.subr.bf16.mxu0 %v4137_v48 }
0x10fa   : > { %v2470_v28 = vpop.permute.xlu1 %2469 }
0x10fb   : > { %v2475_v30 = vsel %vm1000_vm2, %v2470_v28, 0 }
0x10ff   : > { %3856 = vmatmul.mubr.msk.bf16.vlgmr.msra.gmra.mxu0 %vm1000_vm2, %v2243_v23 }
0x1100   : > { %3866 = vmatpush3.bf16.xpose.msra.mxu0 %v2363_v27  ;;  %3867 = vmatprep.mubr.msk.bf16.mxu0 %vm4138_vm1, %v4137_v48 }
0x1101   : > { %3877 = vmatprep.subr.bf16.mxu0 %v4137_v48 }
0x1107   : > { %3868 = vmatmul.mubr.msk.bf16.vlgmr.msra.gmra.mxu0 %vm1000_vm2, %v2356_v29 }
0x1108   : > { %3878 = vmatpush3.bf16.xpose.msra.mxu0 %v2475_v30  ;;  %3879 = vmatprep.mubr.msk.bf16.mxu0 %vm4138_vm1, %v4137_v48 }
0x1109   : > { %3889 = vmatprep.subr.bf16.mxu0 %v4137_v48 }
0x110f   : > { %3880 = vmatmul.mubr.msk.bf16.vlgmr.msra.gmra.mxu0 %vm1000_vm2, %v2468_v31 }
0x1110   : > { %3897 = vmatprep.mubr.msk.bf16.mxu0 %vm4138_vm1, %v4137_v48 }
0x11b7   : > { %v2175_v32 = vpop.f32.mrf.mxu0 }
0x11b8   : > { %v2181_v33 = vmul.f32 0.25, %v2175_v32 }
0x11b9   : > { %v3845_v34 = vpop.f32.mrf.mxu0 }
0x11ba   : > { %v2182_v63 = vsel %vm860_vm4, %v2181_v33, -1e+30 }
0x11bb   : > { %v2178_v35 = vpop.f32.mrf.mxu0  ;;  %v2183_v36 = vsel %vm1049_vm5, %v2182_v63, -inf }
0x11bc   : > { %2184 = vmax.xlane.f32.xlu1 %v2183_v36 }
0x11bd   : > { %v3846_v37 = vpop.f32.mrf.mxu0 }
0x11bf   : > { %v2286_v38 = vpop.f32.mrf.mxu0 }
0x11c0   : > { %v2292_v39 = vmul.f32 0.25, %v2286_v38 }
0x11c1   : > { %v3857_v41 = vpop.f32.mrf.mxu0 }
0x11c2   : > { %v2293_v42 = vsel %vm860_vm4, %v2292_v39, -1e+30 }
0x11c3   : > { %v2289_v43 = vpop.f32.mrf.mxu0  ;;  %v2294_v44 = vsel %vm1049_vm5, %v2293_v42, -inf }
0x11c4   : > { %2295 = vmax.xlane.f32.xlu0 %v2294_v44 }
0x11c5   : > { %v3858_v45 = vpop.f32.mrf.mxu0 }
0x11c7   : > { %v2399_v50 = vpop.f32.mrf.mxu0 }
0x11c8   : > { %v2405_v51 = vmul.f32 0.25, %v2399_v50 }
0x11c9   : > { %v3869_v5 = vpop.f32.mrf.mxu0 }
0x11ca   : > { %v2406_v52 = vsel %vm860_vm4, %v2405_v51, -1e+30  ;;  %v4002_v5 = vld [vmem:[%s5050_s28 + $0x38] sm:$0xff]  }
0x11cb   : > { %v2402_v53 = vpop.f32.mrf.mxu0  ;;  %v2407_v54 = vsel %vm1049_vm5, %v2406_v52, -inf  ;;  %3890 = vmatpush3.bf16.msra.mxu0 %v4002_v5  ;;  %v3582_v5 = vld [vmem:[%s4995_s10 + $0x1] ss:$0 sm:$0xff] }
0x11cc   : > { %2408 = vmax.xlane.f32.xlu0 %v2407_v54  ;;  %v4003_v53 = vld [vmem:[%s5050_s28 + $0x30] sm:$0xff]   ;;  %3891 = vmatprep.subr.bf16.mxu0 %v4137_v48 }
0x11cd   : > { %v3870_v55 = vpop.f32.mrf.mxu0 }
0x11cf   : > { %v2511_v56 = vpop.f32.mrf.mxu0  ;;  %3892 = vmatpush3.bf16.msra.mxu0 %v4003_v53  ;;  %v3583_v53 = vld [vmem:[%s4996_s11 + $0x1] ss:$0 sm:$0xff] }
0x11d0   : > { %v2517_v57 = vmul.f32 0.25, %v2511_v56  ;;  %v4004_v56 = vld [vmem:[%s5050_s28 + $0x28] sm:$0xff]   ;;  %3893 = vmatprep.subr.bf16.mxu0 %v4137_v48 }
0x11d1   : > { %v3881_v59 = vpop.f32.mrf.mxu0 }
0x11d2   : > { %v2518_v60 = vsel %vm860_vm4, %v2517_v57, -1e+30 }
0x11d3   : > { %v2514_v61 = vpop.f32.mrf.mxu0  ;;  %v2519_v62 = vsel %vm1049_vm5, %v2518_v60, -inf  ;;  %3894 = vmatpush3.bf16.msra.mxu0 %v4004_v56 }
0x11d4   : > { %2520 = vmax.xlane.f32.xlu1 %v2519_v62  ;;  %3895 = vmatprep.subr.bf16.mxu0 %v4137_v48 }
0x11d5   : > { %v3882_v25 = vpop.f32.mrf.mxu0 }
0x1245   : > { %v2185_v0 = vpop.xlane.xlu1 %2184 }
0x1246   : > { %v2186_v3 = vsub.f32 %v2182_v63, %v2185_v0  ;;  %v4005_v0 = vld [vmem:[%s5050_s28 + $0x20] sm:$0xff]  }
0x1247   : > { %3896 = vmatpush3.bf16.msra.mxu0 %v4005_v0  ;;  %v4036_v0 = vld [vmem:[%s5001_s16 + $0xe0] sm:$0xff]  }
0x1248   : > { %v2187_v4 = vmul.f32 1.442695, %v2186_v3 }
0x124a   : > { %4100 = vpow2.f32 %v2187_v4 }
0x124d   : > { %v2296_v6 = vpop.xlane.xlu0 %2295 }
0x124e   : > { %v2297_v7 = vsub.f32 %v2293_v42, %v2296_v6 }
0x1250   : > { %v2298_v8 = vmul.f32 1.442695, %v2297_v7 }
0x1252   : > { %4102 = vpow2.f32 %v2298_v8 }
0x1255   : > { %v2409_v9 = vpop.xlane.xlu0 %2408 }
0x1256   : > { %v2410_v10 = vsub.f32 %v2406_v52, %v2409_v9 }
0x1257   : > { %v4101_v11 = vpop.eup %4100 }
0x1258   : > { %v2411_v12 = vmul.f32 1.442695, %v2410_v10  ;;  %v2189_v2 = vsel %vm1049_vm5, %v4101_v11, 0.0 }
0x1259   : > { %2190 = vadd.xlane.f32.xlu0 %v2189_v2 }
0x125a   : > { %4104 = vpow2.f32 %v2411_v12 }
0x125d   : > { %v2521_v17 = vpop.xlane.xlu1 %2520 }
0x125e   : > { %v2522_v19 = vsub.f32 %v2518_v60, %v2521_v17 }
0x125f   : > { %v4103_v13 = vpop.eup %4102 }
0x1260   : > { %v2300_v18 = vsel %vm1049_vm5, %v4103_v13, 0.0  ;;  %v2523_v20 = vmul.f32 1.442695, %v2522_v19 }
0x1261   : > { %2301 = vadd.xlane.f32.xlu1 %v2300_v18 }
0x1262   : > { %4106 = vpow2.f32 %v2523_v20 }
0x1267   : > { %v4105_v14 = vpop.eup %4104 }
0x1268   : > { %v2413_v15 = vsel %vm1049_vm5, %v4105_v14, 0.0 }
0x1269   : > { %2414 = vadd.xlane.f32.xlu0 %v2413_v15 }
0x126f   : > { %v4107_v21 = vpop.eup %4106 }
0x1270   : > { %v2525_v22 = vsel %vm1049_vm5, %v4107_v21, 0.0 }
0x1272   : > { %2419 = vrot.lane.b32.xlu1 %v4684_v16, %s5054_s30  ;;  %s5058_s30 = sld [smem:[#allocation12_spill]] }
0x127f   : > { %2307 = vrot.lane.b32.xlu0 %v4684_v16, %s5055_s26  ;;  %s5059_s26 = sld [smem:[#allocation3_spill]] }
0x1296   : > { %2526 = vadd.xlane.f32.xlu1 %v2525_v22 }
0x12a7   : > { %2531 = vrot.lane.b32.xlu1 %v4684_v16, %s5056_s24 }
0x12e2   : > { %v2191_v23 = vpop.xlane.xlu0 %2190 }
0x12e3   : > { %4108 = vrcp.f32 %v2191_v23 }
0x12ea   : > { %v2302_v24 = vpop.xlane.xlu1 %2301 }
0x12eb   : > { %4110 = vrcp.f32 %v2302_v24 }
0x12ee   : > { %v2420_v33 = vpop.permute.xlu1 %2419 }
0x12ef   : > { %v2425_v63 = vsel %vm1066_vm3, %v2420_v33, 0  ;;  %v4017_v33 = vld [vmem:[%s4999_s14 + $0x64] ss:$8 sps:$4 sm:$0xff]  }
0x12f0   : > { %v4109_v26 = vpop.eup %4108 }
0x12f1   : > { %v2193_v27 = vmul.f32 %v4109_v26, %v4101_v11 }
0x12f2   : > { %v2415_v28 = vpop.xlane.xlu0 %2414 }
0x12f3   : > { %4112 = vrcp.f32 %v2415_v28  ;;  %v2194_v29 = vpack.c.bf16 %v2193_v27, %v2193_v27 }
0x12f5   : > { %3850 = vmatmul.mubr.msk.bf16.vlgmr.msra.gmra.mxu1 %vm1049_vm5, %v2194_v29 }
0x12f6   : > { %v2308_v30 = vpop.permute.xlu0 %2307  ;;  %3861 = vmatprep.mubr.msk.bf16.mxu1 %vm4138_vm1, %v4137_v48 }
0x12f7   : > { %v2313_v31 = vsel %vm1066_vm3, %v2308_v30, 0  ;;  %v4008_v30 = vld [vmem:[%s4997_s12 + $0x74] ss:$8 sps:$4 sm:$0xff]  }
0x12f8   : > { %v4111_v32 = vpop.eup %4110  ;;  %3860 = vmatpush3.bf16.msra.mxu1 %v2313_v31  ;;  %v4006_v31 = vld [vmem:[%s4997_s12 + $0x70] ss:$8 sps:$4 sm:$0xff]  }
0x12f9   : > { %3871 = vmatprep.subr.bf16.mxu1 %v4137_v48  ;;  %v2304_v16 = vmul.f32 %v4111_v32, %v4103_v13  ;;  %v3572_v13 = vld [vmem:[%s4993_s8 + $0x1] ss:$0 sm:$0xff]  ;;  %v4009_v32 = vld [vmem:[%s4999_s14 + $0x70] ss:$8 sps:$4 sm:$0xff]  }
0x12fb   : > { %v2305_v34 = vpack.c.bf16 %v2304_v16, %v2304_v16  ;;  %v4014_v16 = vld [vmem:[%s4997_s12 + $0x64] ss:$8 sps:$4 sm:$0xff]  }
0x12fd   : > { %3862 = vmatmul.mubr.msk.bf16.vlgmr.msra.gmra.mxu1 %vm1049_vm5, %v2305_v34  ;;  %v4012_v34 = vld [vmem:[%s4997_s12 + $0x60] ss:$8 sps:$4 sm:$0xff]  }
0x12fe   : > { %3872 = vmatpush3.bf16.msra.mxu1 %v2425_v63  ;;  %3873 = vmatprep.mubr.msk.bf16.mxu1 %vm4138_vm1, %v4137_v48  ;;  %v4015_v63 = vld [vmem:[%s4999_s14 + $0x60] ss:$8 sps:$4 sm:$0xff]  }
0x12ff   : > { %3883 = vmatprep.subr.bf16.mxu1 %v4137_v48 }
0x1300   : > { %v4113_v35 = vpop.eup %4112 }
0x1301   : > { %v2417_v36 = vmul.f32 %v4113_v35, %v4105_v14  ;;  %v3579_v14 = vld [vmem:[%s4994_s9 + $0x1] ss:$0 sm:$0xff]  ;;  %v4020_v35 = vld [vmem:[%s4997_s12 + $0x54] ss:$8 sps:$4 sm:$0xff]  }
0x1303   : > { %v2418_v37 = vpack.c.bf16 %v2417_v36, %v2417_v36  ;;  %v4023_v36 = vld [vmem:[%s4999_s14 + $0x54] ss:$8 sps:$4 sm:$0xff]  }
0x1305   : > { %3874 = vmatmul.mubr.msk.bf16.vlgmr.msra.gmra.mxu1 %vm1049_vm5, %v2418_v37  ;;  %v4018_v37 = vld [vmem:[%s4997_s12 + $0x50] ss:$8 sps:$4 sm:$0xff]  }
0x1306   : > { %3885 = vmatprep.mubr.msk.bf16.mxu1 %vm4138_vm1, %v4137_v48 }
0x131f   : > { %v2527_v38 = vpop.xlane.xlu1 %2526 }
0x1320   : > { %4114 = vrcp.f32 %v2527_v38  ;;  %v4021_v38 = vld [vmem:[%s4999_s14 + $0x50] ss:$8 sps:$4 sm:$0xff]  }
0x1323   : > { %v2532_v39 = vpop.permute.xlu1 %2531 }
0x1324   : > { %v2537_v41 = vsel %vm1066_vm3, %v2532_v39, 0  ;;  %v4026_v39 = vld [vmem:[%s4997_s12 + $0x44] ss:$8 sps:$4 sm:$0xff]  }
0x1325   : > { %3884 = vmatpush3.bf16.msra.mxu1 %v2537_v41  ;;  %v4029_v41 = vld [vmem:[%s4999_s14 + $0x44] ss:$8 sps:$4 sm:$0xff]  }
0x1326   : > { %2794 = vmatprep.subr.bf16.mxu1 %v4008_v30 }
0x132d   : > { %v4115_v42 = vpop.eup %4114 }
0x132e   : > { %v2529_v43 = vmul.f32 %v4115_v42, %v4107_v21  ;;  %v4024_v42 = vld [vmem:[%s4997_s12 + $0x40] ss:$8 sps:$4 sm:$0xff]  }
0x1330   : > { %v2530_v44 = vpack.c.bf16 %v2529_v43, %v2529_v43  ;;  %v4027_v43 = vld [vmem:[%s4999_s14 + $0x40] ss:$8 sps:$4 sm:$0xff]  }
0x1332   : > { %3886 = vmatmul.mubr.msk.bf16.vlgmr.msra.gmra.mxu1 %vm1049_vm5, %v2530_v44 }
0x1333   : > { %2818 = vmatprep.mubr.bf16.mxu1 %v4136_v1  ;;  %2795 = vmatpush1.bf16.msra.mxu1 %v4006_v31 }
0x1334   : > { %2796 = vmatprep.subr.bf16.mxu1 %v4014_v16 }
0x1337   : > { %2797 = vmatpush1.bf16.msra.mxu1 %v4012_v34 }
0x1338   : > { %2798 = vmatprep.subr.bf16.mxu1 %v4020_v35 }
0x133b   : > { %2799 = vmatpush1.bf16.msra.mxu1 %v4018_v37 }
0x133c   : > { %2800 = vmatprep.subr.bf16.mxu1 %v4026_v39 }
0x133f   : > { %2801 = vmatpush1.bf16.msra.mxu1 %v4024_v42 }
0x13b5   : > { %v2236_v45 = vpop.f32.mrf.mxu1 }
0x13b7   : > { %v3851_v50 = vpop.f32.mrf.mxu1 }
0x13b9   : > { %v2239_v51 = vpop.f32.mrf.mxu1 }
0x13bb   : > { %v3852_v52 = vpop.f32.mrf.mxu1 }
0x13bd   : > { %v2349_v54 = vpop.f32.mrf.mxu1 }
0x13be   : > { %2580 = vrot.lane.b32.xlu0 %v2349_v54, %s5057_s1  ;;  %s5060_s1 = sld [smem:[#allocation13_spill]] }
0x13bf   : > { %v3863_v55 = vpop.f32.mrf.mxu1 }
0x13c1   : > { %v2352_v57 = vpop.f32.mrf.mxu1 }
0x13c2   : > { %v4030_v57 = vld [vmem:[%s5001_s16 + $0xf8] sm:$0xff]  }
0x13c3   : > { %v3864_v59 = vpop.f32.mrf.mxu1  ;;  %3759 = vmatprep.subr.bf16.mxu1 %v4030_v57 }
0x13c4   : > { %v4031_v59 = vld [vmem:[%s5001_s16 + $0xb8] sm:$0xff]  }
0x13c5   : > { %v2461_v60 = vpop.f32.mrf.mxu1 }
0x13c6   : > { %2584 = vrot.lane.b32.xlu1 %v2461_v60, %s5051_s29  ;;  %v4032_v60 = vld [vmem:[%s5001_s16 + $0xf0] sm:$0xff]   ;;  %s3451_s29 = sshll.u32 %s5059_s26, 2 }
0x13c7   : > { %v3875_v61 = vpop.f32.mrf.mxu1  ;;  %s708_s6 = scalar_lea.vmem %s5060_s1, %s3451_s29 }
0x13c8   : > { %v4033_v61 = vld [vmem:[%s5001_s16 + $0xb0] sm:$0xff]  }
0x13c9   : > { %v2464_v62 = vpop.f32.mrf.mxu1 }
0x13ca   : > { %v4034_v62 = vld [vmem:[%s5001_s16 + $0xe8] sm:$0xff]  }
0x13cb   : > { %v3876_v25 = vpop.f32.mrf.mxu1 }
0x13cc   : > { %v4035_v25 = vld [vmem:[%s5001_s16 + $0xa8] sm:$0xff]  }
0x13f2   : > { %v2573_v3 = vpop.f32.mrf.mxu1 }
0x13f3   : > { %2588 = vrot.lane.b32.xlu0 %v2573_v3, %s5052_s25  ;;  %v4037_v3 = vld [vmem:[%s5001_s16 + $0xa0] sm:$0xff]  }
0x13f4   : > { %v3887_v4 = vpop.f32.mrf.mxu1 }
0x13f5   : > { %v4038_v4 = vld [vmem:[%s5001_s16 + $0xd8] sm:$0xff]  }
0x13f6   : > { %v2576_v6 = vpop.f32.mrf.mxu1 }
0x13f7   : > { %v4039_v6 = vld [vmem:[%s5001_s16 + $0x98] sm:$0xff]  }
0x13f8   : > { %v3888_v7 = vpop.f32.mrf.mxu1 }
0x13f9   : > { %v4040_v7 = vld [vmem:[%s5001_s16 + $0xd0] sm:$0xff]  }
0x1430   : > { %v2581_v8 = vpop.permute.xlu0 %2580 }
0x1431   : > { %v2591_v48 = vsel %vm1000_vm2, %v2236_v45, %v2581_v8  ;;  %v4041_v8 = vld [vmem:[%s5001_s16 + $0x90] sm:$0xff]  }
0x1438   : > { %v2585_v9 = vpop.permute.xlu1 %2584 }
0x1439   : > { %v2592_v10 = vsel %vm1460_vm6, %v2591_v48, %v2585_v9  ;;  %v4042_v9 = vld [vmem:[%s5001_s16 + $0xc8] sm:$0xff]  }
0x143a   : > { %v4043_v48 = vld [vmem:[%s5001_s16 + $0x88] sm:$0xff]  }
0x1465   : > { %v2589_v11 = vpop.permute.xlu0 %2588 }
0x1466   : > { %v2593_v12 = vsel %vm1462_vm7, %v2592_v10, %v2589_v11  ;;  %v4044_v10 = vld [vmem:[%s5001_s16 + $0xc0] sm:$0xff]  }
0x1467   : > { %v2594_v2 = vpack.c.bf16 %v2593_v12, %v2593_v12  ;;  %v4045_v11 = vld [vmem:[%s5001_s16 + $0x80] sm:$0xff]  }
0x1468   : > { %v3592_v12 = vld [vmem:[%s4998_s13 + $0x2] sm:$0x3] }
0x1469   : > { %3898 = vmatmul.mubr.msk.bf16.vlgmr.msra.gmra.mxu0 %vm814_vm0, %v2594_v2  ;;  %v2736_v2 = vrot.slane %v3592_v12, %v4377_v49 }
0x146a   : > { %2921 = vmatprep.mubr.bf16.mxu0 %v4136_v1 }
0x1529   : > { %v2673_v18 = vpop.f32.mrf.mxu0 }
0x152a   : > { %v2674_v15 = vadd.f32 %v3572_v13, %v2673_v18  ;;  %v2740_v13 = vrot.slane %v3592_v12, %v4392_v58 }
0x152b   : > { %v3899_v17 = vpop.f32.mrf.mxu0 }
0x152c   : > { %v2687_v19 = vmul.f32 %v3579_v14, %v2674_v15 }
0x152d   : > { %v2676_v20 = vpop.f32.mrf.mxu0 }
0x152e   : > { %v4784_v21 = vadd.f32 %v2687_v19, %v4639_v40  ;;  %v4011_v40 = vld [vmem:[%s4999_s14 + $0x74] ss:$8 sps:$4 sm:$0xff]  }
0x152f   : > { %v3900_v22 = vpop.f32.mrf.mxu0  ;;  %2897 = vmatprep.subr.bf16.mxu0 %v4011_v40 }
0x1530   : > { %v2693_v23 = vsel %vm814_vm0, %v4784_v21, 0.0  ;;  %2898 = vmatpush1.bf16.msra.mxu0 %v4009_v32  ;;  %v3610_v32 = vld [vmem:[%s5000_s15 + $0x2] sm:$0x3] }
0x1531   : > { %2694 = vadd.xlane.f32.xlu1 %v2693_v23  ;;  %2899 = vmatprep.subr.bf16.mxu0 %v4017_v33  ;;  %v2842_v16 = vrot.slane %v3610_v32, %v4377_v49  ;;  %v2846_v33 = vrot.slane %v3610_v32, %v4392_v58 }
0x1534   : > { %2900 = vmatpush1.bf16.msra.mxu0 %v4015_v63 }
0x1535   : > { %2901 = vmatprep.subr.bf16.mxu0 %v4023_v36 }
0x1538   : > { %2902 = vmatpush1.bf16.msra.mxu0 %v4021_v38 }
0x1539   : > { %2903 = vmatprep.subr.bf16.mxu0 %v4029_v41 }
0x153c   : > { %2904 = vmatpush1.bf16.msra.mxu0 %v4027_v43 }
0x15ba   : > { %v2695_v24 = vpop.xlane.xlu1 %2694 }
0x15bb   : > { %v2696_v26 = vmul.f32 0.015625, %v2695_v24 }
0x15bd   : > { %v2697_v27 = vsub.f32 %v4784_v21, %v2696_v26 }
0x15bf   : > { %v2698_v28 = vmul.f32 %v2697_v27, %v2697_v27 }
0x15c1   : > { %v2699_v29 = vsel %vm814_vm0, %v2698_v28, 0.0 }
0x15c2   : > { %2700 = vadd.xlane.f32.xlu0 %v2699_v29 }
0x164b   : > { %v2701_v44 = vpop.xlane.xlu0 %2700 }
0x164c   : > { %v2702_v45 = vmul.f32 0.015625, %v2701_v44 }
0x164e   : > { %v2703_v50 = vadd.f32 1e-06, %v2702_v45  ;;  %v3655_v45 = vld [vmem:[%s5002_s17 + $0x1] ss:$0 sm:$0xff] }
0x1650   : > { %4116 = vrsqrt.f32 %v2703_v50 }
0x165d   : > { %v4117_v51 = vpop.eup %4116 }
0x165e   : > { %v2705_v52 = vmul.f32 %v4117_v51, %v2697_v27 }
0x1660   : > { %v2712_v54 = vmul.f32 %v3582_v5, %v2705_v52  ;;  %v3673_v52 = vld [vmem:[%s5003_s18 + $0x1] ss:$0 sm:$0xff] }
0x1662   : > { %v2719_v55 = vadd.f32 %v3583_v53, %v2712_v54 }
0x1664   : > { %v2720_v56 = vpack.c.bf16 %v2719_v55, %v2719_v55 }
0x1666   : > { %3601 = vmatmul.mubr.msk.bf16.vlgmr.msra.gmra.mxu1 %vm814_vm0, %v2720_v56  ;;  %3619 = vmatmul.mubr.msk.bf16.vlgmr.msra.gmra.mxu0 %vm814_vm0, %v2720_v56 }
0x1667   : > { %3307 = vmatprep.mubr.bf16.mxu0 %v4136_v1  ;;  %3760 = vmatpush3.bf16.msra.mxu1 %v4031_v59 }
0x1668   : > { %3761 = vmatprep.subr.bf16.mxu1 %v4032_v60 }
0x166b   : > { %3762 = vmatpush3.bf16.msra.mxu1 %v4033_v61 }
0x166c   : > { %3763 = vmatprep.subr.bf16.mxu1 %v4034_v62 }
0x166f   : > { %3764 = vmatpush3.bf16.msra.mxu1 %v4035_v25 }
0x1670   : > { %3765 = vmatprep.subr.bf16.mxu1 %v4036_v0  ;;  %v4048_v0 = vld [vmem:[%s5006_s21 + $0x64] ss:$16 sps:$4 sm:$0xff]  }
0x1671   : > { %3283 = vmatprep.subr.bf16.mxu0 %v4048_v0 }
0x1673   : > { %3766 = vmatpush3.bf16.msra.mxu1 %v4037_v3  ;;  %v4046_v3 = vld [vmem:[%s5006_s21 + $0x60] ss:$16 sps:$4 sm:$0xff]  }
0x1674   : > { %3767 = vmatprep.subr.bf16.mxu1 %v4038_v4  ;;  %3284 = vmatpush1.bf16.msra.mxu0 %v4046_v3  ;;  %v4049_v4 = vld [vmem:[%s5006_s21 + $0x40] ss:$16 sps:$4 sm:$0xff]  }
0x1677   : > { %3768 = vmatpush3.bf16.msra.mxu1 %v4039_v6  ;;  %v4054_v6 = vld [vmem:[%s5006_s21 + $0x24] ss:$16 sps:$4 sm:$0xff]  }
0x1678   : > { %3769 = vmatprep.subr.bf16.mxu1 %v4040_v7  ;;  %v4052_v7 = vld [vmem:[%s5006_s21 + $0x20] ss:$16 sps:$4 sm:$0xff]  }
0x167b   : > { %3770 = vmatpush3.bf16.msra.mxu1 %v4041_v8  ;;  %v4057_v8 = vld [vmem:[%s5006_s21 + $0x4] ss:$16 sps:$4 sm:$0xff]  }
0x167c   : > { %3771 = vmatprep.subr.bf16.mxu1 %v4042_v9  ;;  %v4055_v9 = vld [vmem:[%s5006_s21] ss:$16 sps:$4 sm:$0xff]  }
0x167f   : > { %3772 = vmatpush3.bf16.msra.mxu1 %v4043_v48  ;;  %v4060_v48 = vld [vmem:[%s5006_s21 + $0x6c] ss:$16 sps:$4 sm:$0xff]  }
0x1680   : > { %3773 = vmatprep.subr.bf16.mxu1 %v4044_v10 }
0x1683   : > { %3774 = vmatpush3.bf16.msra.mxu1 %v4045_v11 }
0x1726   : > { %v2820_v18 = vpop.f32.mrf.mxu1  ;;  %v2923_v14 = vpop.f32.mrf.mxu0 }
0x1727   : > { %v2821_v15 = vadd.f32 %v2820_v18, %v2736_v2  ;;  %v2924_v36 = vadd.f32 %v2923_v14, %v2842_v16  ;;  %v3136_v14 = vld [vmem:[%s5005_s20] sm:$0x1]  ;;  %v4146_v16 = vmov 1966171168  }
0x1728   : > { %v2822_v17 = vpop.f32.mrf.mxu1  ;;  %v2925_v19 = vpop.f32.mrf.mxu0 }
0x1729   : > { %v3620_v20 = vmul.f32 -1.442695, %v2821_v15  ;;  %v2823_v22 = vadd.f32 %v2822_v17, %v2740_v13  ;;  %v2926_v38 = vadd.f32 %v2925_v19, %v2846_v33  ;;  %v3135_v13 = vld [vmem:[%s5004_s19] sm:$0x1]  ;;  %v4058_v19 = vld [vmem:[%s5006_s21 + $0x68] ss:$16 sps:$4 sm:$0xff]   ;;  %v3364_v33 = vunpack.c.l.s4 %v4146_v16 }
0x172a   : > { %v2824_v23 = vpop.f32.mrf.mxu1  ;;  %v2927_v24 = vpop.f32.mrf.mxu0 }
0x172b   : > { %4118 = vpow2.f32 %v3620_v20  ;;  %v3621_v26 = vmul.f32 -1.442695, %v2823_v22  ;;  %v4061_v23 = vld [vmem:[%s5006_s21 + $0x48] ss:$16 sps:$4 sm:$0xff]   ;;  %v4066_v24 = vld [vmem:[%s5006_s21 + $0x2c] ss:$16 sps:$4 sm:$0xff]  }
0x172c   : > { %v2825_v27 = vpop.f32.mrf.mxu1  ;;  %v2928_v28 = vpop.f32.mrf.mxu0 }
0x172d   : > { %4120 = vpow2.f32 %v3621_v26  ;;  %v4064_v26 = vld [vmem:[%s5006_s21 + $0x28] ss:$16 sps:$4 sm:$0xff]   ;;  %v4069_v27 = vld [vmem:[%s5006_s21 + $0xc] ss:$16 sps:$4 sm:$0xff]  }
0x1738   : > { %v4119_v29 = vpop.eup %4118 }
0x1739   : > { %v2936_v30 = vadd.f32 1.0, %v4119_v29 }
0x173a   : > { %v4121_v40 = vpop.eup %4120 }
0x173b   : > { %4122 = vrcp.f32 %v2936_v30  ;;  %v2937_v31 = vadd.f32 1.0, %v4121_v40 }
0x173d   : > { %4124 = vrcp.f32 %v2937_v31  ;;  %v3170_v31 = vld [vmem:[%s5058_s30] sm:$0xf] }
0x173e   : > { %v3259_v32 = vrot.slane %v3170_v31, %v4392_v58 }
0x1748   : > { %v4123_v34 = vpop.eup %4122 }
0x1749   : > { %v2942_v63 = vmul.f32 %v4123_v34, %v2821_v15  ;;  %v3262_v34 = vsub.s32 2, %v4372_v47 }
0x174a   : > { %v4125_v35 = vpop.eup %4124 }
0x174b   : > { %v2943_v37 = vmul.f32 %v4125_v35, %v2823_v22  ;;  %v2944_v39 = vmul.f32 %v2942_v63, %v2924_v36  ;;  %v4063_v22 = vld [vmem:[%s5006_s21 + $0x4c] ss:$16 sps:$4 sm:$0xff]   ;;  %v3266_v63 = vsub.s32 3, %v4372_v47  ;;  %v3255_v35 = vrot.slane %v3170_v31, %v4377_v49 }
0x174d   : > { %v2945_v41 = vmul.f32 %v2943_v37, %v2926_v38  ;;  %v2946_v43 = vpack.c.bf16 %v2944_v39, %v2944_v39  ;;  %v3365_v37 = vunpack.c.0.s8 %v3364_v33  ;;  %v3263_v38 = vrot.slane %v3170_v31, %v3262_v34 }
0x174e   : > { %v3267_v39 = vrot.slane %v3170_v31, %v3266_v63 }
0x174f   : > { %v2947_v42 = vpack.c.bf16 %v2945_v41, %v2945_v41 }
0x1751   : > { %3117 = vmatprep.mubr.bf16.mxu1 %v2947_v42 }
0x1752   : > { %3118 = vmatmul.mubr.bf16.vlgmr.msra.gmra.mxu1 %v2946_v43 }
0x1812   : > { %v3775_v44 = vpop.f32.mrf.mxu1 }
0x1814   : > { %v3776_v50 = vpop.f32.mrf.mxu1 }
0x1815   : > { %v3777_v51 = vadd.f32 %v3776_v50, %v3775_v44 }
0x1816   : > { %v3778_v5 = vpop.f32.mrf.mxu1 }
0x1817   : > { %v3120_v53 = vadd.f32 %v3777_v51, %v3655_v45  ;;  %v3368_v45 = vsub.s32 %v3365_v37, %v4372_v47 }
0x1818   : > { %v3779_v54 = vpop.f32.mrf.mxu1 }
0x1819   : > { %v3133_v55 = vmul.f32 %v3673_v52, %v3120_v53 }
0x181b   : > { %v3134_v56 = vadd.f32 %v3133_v55, %v4784_v21  ;;  %v4051_v21 = vld [vmem:[%s5006_s21 + $0x44] ss:$16 sps:$4 sm:$0xff]  }
0x181c   : > { %3285 = vmatprep.subr.bf16.mxu0 %v4051_v21 }
0x181d   : > { %v3138_v57 = vsel %vm3137_vm8, %v3134_v56, 0.0  ;;  %3286 = vmatpush1.bf16.msra.mxu0 %v4049_v4 }
0x181e   : > { %3139 = vadd.xlane.f32.xlu0 %v3138_v57  ;;  %3287 = vmatprep.subr.bf16.mxu0 %v4054_v6 }
0x1821   : > { %3288 = vmatpush1.bf16.msra.mxu0 %v4052_v7 }
0x1822   : > { %3289 = vmatprep.subr.bf16.mxu0 %v4057_v8 }
0x1825   : > { %3290 = vmatpush1.bf16.msra.mxu0 %v4055_v9 }
0x1826   : > { %3324 = vmatprep.subr.bf16.mxu0 %v4060_v48 }
0x18a7   : > { %v3140_v59 = vpop.xlane.xlu0 %3139 }
0x18a8   : > { %v3141_v60 = vmul.f32 0.015625, %v3140_v59 }
0x18aa   : > { %v3142_v61 = vsub.f32 %v3134_v56, %v3141_v60 }
0x18ac   : > { %v3143_v62 = vmul.f32 %v3142_v61, %v3142_v61 }
0x18ae   : > { %v3144_v25 = vsel %vm3137_vm8, %v3143_v62, 0.0 }
0x18af   : > { %3145 = vadd.xlane.f32.xlu1 %v3144_v25 }
0x1938   : > { %v3146_v10 = vpop.xlane.xlu1 %3145 }
0x1939   : > { %v3147_v11 = vmul.f32 0.015625, %v3146_v10 }
0x193b   : > { %v3148_v12 = vadd.f32 1e-06, %v3147_v11 }
0x193d   : > { %4126 = vrsqrt.f32 %v3148_v12 }
0x194a   : > { %v4127_v2 = vpop.eup %4126 }
0x194b   : > { %v3150_v18 = vmul.f32 %v4127_v2, %v3142_v61 }
0x194d   : > { %v3151_v15 = vmul.f32 %v3150_v18, %v3135_v13 }
0x194f   : > { %v3152_v17 = vadd.f32 %v3151_v15, %v3136_v14 }
0x1951   : > { %v3153_v20 = vpack.c.bf16 %v3152_v17, %v3152_v17 }
0x1953   : > { %3690 = vmatmul.mubr.msk.bf16.vlgmr.msra.gmra.mxu0 %vm814_vm0, %v3153_v20 }
0x1954   : > { %3325 = vmatpush1.bf16.msra.mxu0 %v4058_v19  ;;  %3348 = vmatprep.mubr.bf16.mxu0 %v4136_v1  ;;  %v4067_v1 = vld [vmem:[%s5006_s21 + $0x8] ss:$16 sps:$4 sm:$0xff]  }
0x1955   : > { %3326 = vmatprep.subr.bf16.mxu0 %v4063_v22 }
0x1958   : > { %3327 = vmatpush1.bf16.msra.mxu0 %v4061_v23 }
0x1959   : > { %3328 = vmatprep.subr.bf16.mxu0 %v4066_v24 }
0x195c   : > { %3329 = vmatpush1.bf16.msra.mxu0 %v4064_v26 }
0x195d   : > { %3330 = vmatprep.subr.bf16.mxu0 %v4069_v27 }
0x1960   : > { %3331 = vmatpush1.bf16.msra.mxu0 %v4067_v1 }
0x1963   : > { %3691 = vmatmul.mubr.msk.bf16.vlgmr.msra.gmra.mxu0 %vm814_vm0, %v3153_v20 }
0x1a13   : > { %v3309_v28 = vpop.f32.mrf.mxu0 }
0x1a14   : > { %v3310_v42 = vadd.f32 %v3309_v28, %v3255_v35 }
0x1a15   : > { %v3311_v29 = vpop.f32.mrf.mxu0 }
0x1a16   : > { %v3312_v36 = vadd.f32 %v3311_v29, %v3259_v32 }
0x1a17   : > { %v3313_v30 = vpop.f32.mrf.mxu0 }
0x1a18   : > { %v3361_v44 = vcombine.low %v3310_v42, %v3312_v36 }
0x1a19   : > { %v3314_v40 = vpop.f32.mrf.mxu0 }
0x1a1a   : > { %v3369_v53 = vrot.slane %v3361_v44, %v3368_v45 }
0x1a23   : > { %v3350_v41 = vpop.f32.mrf.mxu0 }
0x1a24   : > { %v3351_v58 = vadd.f32 %v3350_v41, %v3263_v38 }
0x1a25   : > { %v3352_v43 = vpop.f32.mrf.mxu0 }
0x1a26   : > { %v3353_v50 = vadd.f32 %v3352_v43, %v3267_v39 }
0x1a27   : > { %v3354_v51 = vpop.f32.mrf.mxu0 }
0x1a28   : > { %v3362_v5 = vcombine.low %v3351_v58, %v3353_v50 }
0x1a29   : > { %v3355_v52 = vpop.f32.mrf.mxu0 }
0x1a2a   : > { %v3376_v54 = vrot.slane %v3362_v5, %v3368_v45 }
0x1a2c   : > { %v3377_v55 = vcombine.low %v3369_v53, %v3376_v54 }
0x1a2e   : > { %v3384_v49 = vrot.slane %v3377_v55, %v3368_v45 }
0x1a30   : > { %3390 = vst.msk [vmem:[%s708_s6] sm:$0xf] %vm3388_vm9, %v3384_v49 }
0x1a31 PF: > { %s5061_s5 = sld [smem:[#allocation2_spill]] }
0x1a37   : > { %s33_s4 = sadd.s32 1, %s5061_s5  }
0x1a38   : > { %p30_p4 = scmp.ge.s32.totalorder %s33_s4, 4  }
0x1a3a   :  { %32 = sbr.rel (!%p30_p4) target bundleno = 11 (0xb), region = 158 }

</bundles_post_ra>
